<compile_context>
chip_gen: v5e
topology: v5e:2x2
jax: 0.10.0
libtpu: 0.0.40
codegen_flags: <defaults>
</compile_context>

<pallas_src>
import functools

import jax
import jax.numpy as jnp
from jax.experimental import pallas as pl
from jax.experimental.pallas import tpu as pltpu


def _mlp_kernel(x_ref, w1_ref, b1_ref, w2_ref, b2_ref, o_ref, acc_ref):
    # x_ref:  (tm, d_model)        bf16
    # w1_ref: (d_model, th)        bf16     b1_ref: (1, th)      f32
    # w2_ref: (th, d_model)        bf16     b2_ref: (1, d_model) f32
    # o_ref:  (tm, d_model)        x.dtype
    # acc_ref:(tm, d_model)        f32 scratch, carried across hidden axis
    h_idx = pl.program_id(1)

    @pl.when(h_idx == 0)
    def _():
        acc_ref[...] = jnp.zeros_like(acc_ref)

    # First matmul on this hidden slice (bf16 inputs, f32 accumulation).
    h = jnp.dot(x_ref[...], w1_ref[...], preferred_element_type=jnp.float32)
    h = jnp.maximum(h + b1_ref[...], 0.0)  # bias + ReLU

    # Second matmul: accumulate this hidden slice's contribution.
    acc_ref[...] += jnp.dot(h.astype(w2_ref.dtype), w2_ref[...],
                            preferred_element_type=jnp.float32)

    @pl.when(h_idx == pl.num_programs(1) - 1)
    def _():
        o_ref[...] = (acc_ref[...] + b2_ref[...]).astype(o_ref.dtype)


@functools.partial(jax.jit, static_argnames=("tm", "th", "compute_dtype"))
def mlp_forward(x, w1, b1, w2, b2, *, tm=256, th=2048,
                compute_dtype=jnp.bfloat16):
    """x: [batch, seq, d_model] -> [batch, seq, d_model] (eval-mode MLP)."""
    batch, seq, d_model = x.shape
    hidden = w1.shape[1]
    n = batch * seq

    assert d_model % 128 == 0, "d_model must be a multiple of 128 (lane dim)"
    assert hidden % 128 == 0, "hidden must be a multiple of 128 (lane dim)"
    assert n % 8 == 0, "batch*seq must be a multiple of 8 (sublane dim)"

    # Clamp / align tiles to the problem size (static under jit).
    tm = min(tm, n)
    while n % tm != 0:
        tm -= 8
    th = min(th, hidden)
    while hidden % th != 0:
        th -= 128
    assert tm >= 8 and tm % 8 == 0
    assert th >= 128 and th % 128 == 0

    x2d = x.reshape(n, d_model).astype(compute_dtype)
    w1c = w1.astype(compute_dtype)
    w2c = w2.astype(compute_dtype)
    b1_2d = b1.reshape(1, hidden).astype(jnp.float32)
    b2_2d = b2.reshape(1, d_model).astype(jnp.float32)

    cbytes = jnp.dtype(compute_dtype).itemsize
    obytes = jnp.dtype(x.dtype).itemsize

    # VMEM footprint: double-buffered input/output tiles + f32 accumulator.
    vmem_est = (2 * (tm * d_model * cbytes          # x tile
                     + d_model * th * cbytes        # W1 column tile
                     + th * 4                       # b1 tile
                     + th * d_model * cbytes        # W2 row tile
                     + d_model * 4                  # b2
                     + tm * d_model * obytes)       # out tile
                + tm * d_model * 4)                 # accumulator
    vmem_limit = int(min(max(vmem_est + (4 << 20), 16 << 20), 128 << 20))

    cost = pl.CostEstimate(
        flops=4 * n * d_model * hidden,             # two matmuls
        transcendentals=0,
        bytes_accessed=(n * d_model * cbytes + d_model * hidden * cbytes
                        + hidden * 4 + hidden * d_model * cbytes
                        + d_model * 4 + n * d_model * obytes),
    )

    out2d = pl.pallas_call(
        _mlp_kernel,
        out_shape=jax.ShapeDtypeStruct((n, d_model), x.dtype),
        grid_spec=pltpu.PrefetchScalarGridSpec(
            num_scalar_prefetch=0,
            grid=(n // tm, hidden // th),           # rows parallel, hidden last
            in_specs=[
                pl.BlockSpec((tm, d_model), lambda i, h: (i, 0)),   # x tile
                pl.BlockSpec((d_model, th), lambda i, h: (0, h)),   # W1 col tile
                pl.BlockSpec((1, th), lambda i, h: (0, h)),         # b1 tile
                pl.BlockSpec((th, d_model), lambda i, h: (h, 0)),   # W2 row tile
                pl.BlockSpec((1, d_model), lambda i, h: (0, 0)),    # b2
            ],
            out_specs=pl.BlockSpec((tm, d_model), lambda i, h: (i, 0)),
            scratch_shapes=[pltpu.VMEM((tm, d_model), jnp.float32)],
        ),
        compiler_params=pltpu.CompilerParams(
            dimension_semantics=("parallel", "arbitrary"),
            vmem_limit_bytes=vmem_limit),
        cost_estimate=cost,
    )(x2d, w1c, b1_2d, w2c, b2_2d)

    return out2d.reshape(batch, seq, d_model)


def init_mlp_params(key, d_model, dtype=jnp.float32):
    """Deterministic init matching nn.Linear's U(-1/sqrt(fan_in), 1/sqrt(fan_in))."""
    hidden = 4 * d_model
    k1, k2, k3, k4 = jax.random.split(key, 4)
    lim1 = 1.0 / (d_model ** 0.5)
    lim2 = 1.0 / (hidden ** 0.5)
    # Stored as [in, out] (transpose of torch's [out, in]).
    w1 = jax.random.uniform(k1, (d_model, hidden), dtype, -lim1, lim1)
    b1 = jax.random.uniform(k2, (hidden,), dtype, -lim1, lim1)
    w2 = jax.random.uniform(k3, (hidden, d_model), dtype, -lim2, lim2)
    b2 = jax.random.uniform(k4, (d_model,), dtype, -lim2, lim2)
    return w1, b1, w2, b2


if __name__ == "__main__":
    key = jax.random.PRNGKey(0)
    # Small but lane-dense demo config: hidden = 4 * d_model = 512, n = 256 rows.
    batch, seq, d_model = 2, 128, 128

    kx, kp = jax.random.split(key)
    x = jax.random.normal(kx, (batch, seq, d_model), jnp.float32)
    w1, b1, w2, b2 = init_mlp_params(kp, d_model)

    out = mlp_forward(x, w1, b1, w2, b2)
    jax.block_until_ready(out)
    assert out.shape == (batch, seq, d_model)

    # Reference in plain JAX with matching bf16 rounding of matmul inputs
    # (f32 accumulation), inference-mode dropout = identity.
    xb = x.astype(jnp.bfloat16).astype(jnp.float32)
    w1b = w1.astype(jnp.bfloat16).astype(jnp.float32)
    w2b = w2.astype(jnp.bfloat16).astype(jnp.float32)
    h_ref = jnp.maximum(xb @ w1b + b1, 0.0)
    ref = h_ref.astype(jnp.bfloat16).astype(jnp.float32) @ w2b + b2

    assert jnp.allclose(out, ref, atol=5e-3, rtol=5e-3), (
        float(jnp.max(jnp.abs(out - ref))))

    print("KERNEL_OK")
</pallas_src>

<mosaic_0001>
module attributes {stable_mosaic.version = 11 : i64} {
  func.func @_mlp_kernel(%arg0: i32, %arg1: i32, %arg2: memref<256x128xbf16, #tpu.memory_space<vmem>>, %arg3: memref<128x512xbf16, #tpu.memory_space<vmem>>, %arg4: memref<1x512xf32, #tpu.memory_space<vmem>>, %arg5: memref<512x128xbf16, #tpu.memory_space<vmem>>, %arg6: memref<1x128xf32, #tpu.memory_space<vmem>>, %arg7: memref<256x128xf32, #tpu.memory_space<vmem>>, %arg8: memref<256x128xf32, #tpu.memory_space<vmem>>) attributes {dimension_semantics = [#tpu.dimension_semantics<parallel>, #tpu.dimension_semantics<arbitrary>], iteration_bounds = array<i64: 1, 1>, scalar_prefetch = 0 : i64, scratch_operands = 1 : i64, tpu.core_type = #tpu.core_type<tc>, window_params = [{transform_indices = @transform_0, window_bounds = array<i64: 256, 128>}, {transform_indices = @transform_1, window_bounds = array<i64: 128, 512>}, {transform_indices = @transform_2, window_bounds = array<i64: 1, 512>}, {transform_indices = @transform_3, window_bounds = array<i64: 512, 128>}, {pipeline_mode = #tpu.pipeline_mode<synchronous>, transform_indices = @transform_4, window_bounds = array<i64: 1, 128>}, {transform_indices = @transform_5, window_bounds = array<i64: 256, 128>}]} {
    %c0_i32 = arith.constant 0 : i32
    %0 = arith.cmpi eq, %arg1, %c0_i32 : i32
    %1 = arith.extui %0 : i1 to i32
    %c0_i32_0 = arith.constant 0 : i32
    %2 = arith.cmpi ne, %1, %c0_i32_0 : i32
    scf.if %2 {
      %cst_16 = arith.constant 0.000000e+00 : f32
      %20 = vector.broadcast %cst_16 : f32 to vector<256x128xf32>
      %c0_17 = arith.constant 0 : index
      %c0_18 = arith.constant 0 : index
      %21 = vector.load %arg8[%c0_17, %c0_18] : memref<256x128xf32, #tpu.memory_space<vmem>>, vector<256x128xf32>
      tpu.vector_store %arg8[%c0_17, %c0_18], %20 {strides = array<i32>} : memref<256x128xf32, #tpu.memory_space<vmem>>, vector<256x128xf32>,
    } else {
    }
    %c0 = arith.constant 0 : index
    %c0_1 = arith.constant 0 : index
    %3 = vector.load %arg2[%c0, %c0_1] : memref<256x128xbf16, #tpu.memory_space<vmem>>, vector<256x128xbf16>
    %c0_2 = arith.constant 0 : index
    %c0_3 = arith.constant 0 : index
    %4 = vector.load %arg3[%c0_2, %c0_3] : memref<128x512xbf16, #tpu.memory_space<vmem>>, vector<128x512xbf16>
    %cst = arith.constant dense<0.000000e+00> : vector<256x512xf32>
    %5 = tpu.matmul %3, %4, %cst {dimension_numbers = #tpu.dot_dimension_numbers<[1], [0], [0], [1], [0, 0, 1, 1], [], []>} : vector<256x128xbf16>, vector<128x512xbf16>, vector<256x512xf32> -> vector<256x512xf32>
    %c0_4 = arith.constant 0 : index
    %c0_5 = arith.constant 0 : index
    %6 = vector.load %arg4[%c0_4, %c0_5] : memref<1x512xf32, #tpu.memory_space<vmem>>, vector<1x512xf32>
    %7 = vector.broadcast %6 : vector<1x512xf32> to vector<256x512xf32>
    %8 = arith.addf %5, %7 : vector<256x512xf32>
    %cst_6 = arith.constant 0.000000e+00 : f32
    %9 = vector.broadcast %cst_6 : f32 to vector<256x512xf32>
    %10 = arith.maximumf %8, %9 : vector<256x512xf32>
    %c0_7 = arith.constant 0 : index
    %c0_8 = arith.constant 0 : index
    %11 = vector.load %arg8[%c0_7, %c0_8] : memref<256x128xf32, #tpu.memory_space<vmem>>, vector<256x128xf32>
    %12 = arith.truncf %10 : vector<256x512xf32> to vector<256x512xbf16>
    %c0_9 = arith.constant 0 : index
    %c0_10 = arith.constant 0 : index
    %13 = vector.load %arg5[%c0_9, %c0_10] : memref<512x128xbf16, #tpu.memory_space<vmem>>, vector<512x128xbf16>
    %cst_11 = arith.constant dense<0.000000e+00> : vector<256x128xf32>
    %14 = tpu.matmul %12, %13, %cst_11 {dimension_numbers = #tpu.dot_dimension_numbers<[1], [0], [0], [1], [0, 0, 1, 1], [], []>} : vector<256x512xbf16>, vector<512x128xbf16>, vector<256x128xf32> -> vector<256x128xf32>
    %15 = arith.addf %11, %14 : vector<256x128xf32>
    %c0_12 = arith.constant 0 : index
    %c0_13 = arith.constant 0 : index
    %16 = vector.load %arg8[%c0_12, %c0_13] : memref<256x128xf32, #tpu.memory_space<vmem>>, vector<256x128xf32>
    tpu.vector_store %arg8[%c0_12, %c0_13], %15 {strides = array<i32>} : memref<256x128xf32, #tpu.memory_space<vmem>>, vector<256x128xf32>,
    %c0_i32_14 = arith.constant 0 : i32
    %17 = arith.cmpi eq, %arg1, %c0_i32_14 : i32
    %18 = arith.extui %17 : i1 to i32
    %c0_i32_15 = arith.constant 0 : i32
    %19 = arith.cmpi ne, %18, %c0_i32_15 : i32
    scf.if %19 {
      %c0_16 = arith.constant 0 : index
      %c0_17 = arith.constant 0 : index
      %20 = vector.load %arg8[%c0_16, %c0_17] : memref<256x128xf32, #tpu.memory_space<vmem>>, vector<256x128xf32>
      %c0_18 = arith.constant 0 : index
      %c0_19 = arith.constant 0 : index
      %21 = vector.load %arg6[%c0_18, %c0_19] : memref<1x128xf32, #tpu.memory_space<vmem>>, vector<1x128xf32>
      %22 = vector.broadcast %21 : vector<1x128xf32> to vector<256x128xf32>
      %23 = arith.addf %20, %22 : vector<256x128xf32>
      %c0_20 = arith.constant 0 : index
      %c0_21 = arith.constant 0 : index
      %24 = vector.load %arg7[%c0_20, %c0_21] : memref<256x128xf32, #tpu.memory_space<vmem>>, vector<256x128xf32>
      tpu.vector_store %arg7[%c0_20, %c0_21], %23 {strides = array<i32>} : memref<256x128xf32, #tpu.memory_space<vmem>>, vector<256x128xf32>,
    } else {
    }
    return
  }
  func.func @transform_0(%arg0: i32, %arg1: i32) -> (i32, i32) {
    %c0_i32 = arith.constant 0 : i32
    %c0_i32_0 = arith.constant 0 : i32
    return %arg0, %c0_i32 : i32, i32
  }
  func.func @transform_1(%arg0: i32, %arg1: i32) -> (i32, i32) {
    %c0_i32 = arith.constant 0 : i32
    %c0_i32_0 = arith.constant 0 : i32
    return %c0_i32, %arg1 : i32, i32
  }
  func.func @transform_2(%arg0: i32, %arg1: i32) -> (i32, i32) {
    %c0_i32 = arith.constant 0 : i32
    %c0_i32_0 = arith.constant 0 : i32
    return %c0_i32, %arg1 : i32, i32
  }
  func.func @transform_3(%arg0: i32, %arg1: i32) -> (i32, i32) {
    %c0_i32 = arith.constant 0 : i32
    %c0_i32_0 = arith.constant 0 : i32
    return %arg1, %c0_i32 : i32, i32
  }
  func.func @transform_4(%arg0: i32, %arg1: i32) -> (i32, i32) {
    %c0_i32 = arith.constant 0 : i32
    %c0_i32_0 = arith.constant 0 : i32
    %c0_i32_1 = arith.constant 0 : i32
    return %c0_i32, %c0_i32_0 : i32, i32
  }
  func.func @transform_5(%arg0: i32, %arg1: i32) -> (i32, i32) {
    %c0_i32 = arith.constant 0 : i32
    %c0_i32_0 = arith.constant 0 : i32
    return %arg0, %c0_i32 : i32, i32
  }
}

</mosaic_0001>

<bundles_post_ra>
// kernel: mlp_forward.1
= control target key start
LH: loop header
LB: loop body
LE: loop exit
PB: predicated region body
PF: predicated region fallthrough
CT: control target
= control target key end

     0   :  { %s2934_s0 = inlined_call_operand.vmem [shape: bf16[256,128], index: 0, kind: input, shape index: {}]   ;;  %s2935_s1 = inlined_call_operand.vmem [shape: bf16[128,512], index: 1, kind: input, shape index: {}]   ;;  %s2936_s2 = inlined_call_operand.vmem [shape: f32[1,512], index: 2, kind: input, shape index: {}]   ;;  %s2937_s3 = inlined_call_operand.vmem [shape: bf16[512,128], index: 3, kind: input, shape index: {}]   ;;  %s2938_s4 = inlined_call_operand.vmem [shape: f32[1,128], index: 4, kind: input, shape index: {}]   ;;  %s2939_s5 = inlined_call_operand.hbm [shape: f32[256,128], index: 5, kind: output, shape index: {}]  }
   0x1   :  { %v1942_v0 = vld [vmem:[%s2935_s1 + $0xe0] sm:$0xf]  ;;  %v2130_v1 = vld [vmem:[%s2935_s1 + $0xec] sm:$0xf0]  ;;  %v2128_v2 = vld [vmem:[%s2935_s1 + $0xe4] sm:$0xf] }
   0x2   :  { %v1943_v3 = vor.u32 %v2130_v1, %v1942_v0  ;;  %v1944_v4 = vld [vmem:[%s2935_s1 + $0xf0] sm:$0xf0]  ;;  %v1950_v5 = vld [vmem:[%s2935_s1 + $0xe8] sm:$0xf]  ;;  %v2131_v6 = vld [vmem:[%s2935_s1 + $0xf4] sm:$0xf0] }
   0x3   :  { %v1947_v7 = vor.u32 %v2128_v2, %v1944_v4  ;;  %v1951_v8 = vor.u32 %v2131_v6, %v1950_v5  ;;  %v2129_v9 = vld [vmem:[%s2935_s1 + $0xec] sm:$0xf]  ;;  %v1952_v10 = vld [vmem:[%s2935_s1 + $0xf8] sm:$0xf0]  ;;  %v1926_v11 = vld [vmem:[%s2935_s1 + $0xc0] sm:$0xf] }
   0x4   :  { %387 = vmatpush.bf16.msra.mxu0 %v1943_v3  ;;  %v1955_v12 = vor.u32 %v2129_v9, %v1952_v10  ;;  %v2126_v13 = vld [vmem:[%s2935_s1 + $0xcc] sm:$0xf0]  ;;  %v2124_v14 = vld [vmem:[%s2935_s1 + $0xc4] sm:$0xf]  ;;  %v1928_v15 = vld [vmem:[%s2935_s1 + $0xd0] sm:$0xf0] }
   0x5   :  { %476 = vmatpush.bf16.msra.mxu1 %v1947_v7  ;;  %565 = vmatpush.bf16.msra.mxu2 %v1951_v8  ;;  %v1927_v16 = vor.u32 %v2126_v13, %v1926_v11  ;;  %v1931_v17 = vor.u32 %v2124_v14, %v1928_v15  ;;  %v1934_v18 = vld [vmem:[%s2935_s1 + $0xc8] sm:$0xf]  ;;  %v2127_v19 = vld [vmem:[%s2935_s1 + $0xd4] sm:$0xf0]  ;;  %v2125_v20 = vld [vmem:[%s2935_s1 + $0xcc] sm:$0xf] }
   0x6   :  { %654 = vmatpush.bf16.msra.mxu3 %v1955_v12  ;;  %v1935_v21 = vor.u32 %v2127_v19, %v1934_v18  ;;  %v1936_v22 = vld [vmem:[%s2935_s1 + $0xd8] sm:$0xf0]  ;;  %v1910_v23 = vld [vmem:[%s2935_s1 + $0xa0] sm:$0xf]  ;;  %v2122_v24 = vld [vmem:[%s2935_s1 + $0xac] sm:$0xf0] }
   0x7   :  { %v1939_v25 = vor.u32 %v2125_v20, %v1936_v22  ;;  %v2120_v26 = vld [vmem:[%s2935_s1 + $0xa4] sm:$0xf]  ;;  %v1912_v27 = vld [vmem:[%s2935_s1 + $0xb0] sm:$0xf0]  ;;  %v1918_v28 = vld [vmem:[%s2935_s1 + $0xa8] sm:$0xf]  ;;  %v1911_v29 = vor.u32 %v2122_v24, %v1910_v23 }
   0x8   :  { %388 = vmatpush.bf16.msra.mxu0 %v1927_v16  ;;  %v2123_v30 = vld [vmem:[%s2935_s1 + $0xb4] sm:$0xf0]  ;;  %v2121_v31 = vld [vmem:[%s2935_s1 + $0xac] sm:$0xf]  ;;  %v1920_v32 = vld [vmem:[%s2935_s1 + $0xb8] sm:$0xf0]  ;;  %v1915_v33 = vor.u32 %v2120_v26, %v1912_v27 }
   0x9   :  { %477 = vmatpush.bf16.msra.mxu1 %v1931_v17  ;;  %566 = vmatpush.bf16.msra.mxu2 %v1935_v21  ;;  %v1919_v34 = vor.u32 %v2123_v30, %v1918_v28  ;;  %v1894_v35 = vld [vmem:[%s2935_s1 + $0x80] sm:$0xf]  ;;  %v2118_v36 = vld [vmem:[%s2935_s1 + $0x8c] sm:$0xf0]  ;;  %v2116_v37 = vld [vmem:[%s2935_s1 + $0x84] sm:$0xf]  ;;  %v1923_v38 = vor.u32 %v2121_v31, %v1920_v32 }
   0xa   :  { %655 = vmatpush.bf16.msra.mxu3 %v1939_v25  ;;  %v1896_v39 = vld [vmem:[%s2935_s1 + $0x90] sm:$0xf0]  ;;  %v1902_v40 = vld [vmem:[%s2935_s1 + $0x88] sm:$0xf]  ;;  %v2119_v41 = vld [vmem:[%s2935_s1 + $0x94] sm:$0xf0]  ;;  %v1895_v44 = vor.u32 %v2118_v36, %v1894_v35 }
   0xb   :  { %v2117_v42 = vld [vmem:[%s2935_s1 + $0x8c] sm:$0xf]  ;;  %v1904_v43 = vld [vmem:[%s2935_s1 + $0x98] sm:$0xf0]  ;;  %v1899_v45 = vor.u32 %v2116_v37, %v1896_v39  ;;  %v1903_v46 = vor.u32 %v2119_v41, %v1902_v40  ;;  %v1878_v47 = vld [vmem:[%s2935_s1 + $0x60] sm:$0xf] }
   0xc   :  { %389 = vmatpush.bf16.msra.mxu0 %v1911_v29  ;;  %v2114_v48 = vld [vmem:[%s2935_s1 + $0x6c] sm:$0xf0]  ;;  %v2112_v49 = vld [vmem:[%s2935_s1 + $0x64] sm:$0xf]  ;;  %v1907_v50 = vor.u32 %v2117_v42, %v1904_v43  ;;  %v1880_v51 = vld [vmem:[%s2935_s1 + $0x70] sm:$0xf0] }
   0xd   :  { %478 = vmatpush.bf16.msra.mxu1 %v1915_v33  ;;  %567 = vmatpush.bf16.msra.mxu2 %v1919_v34  ;;  %v1886_v52 = vld [vmem:[%s2935_s1 + $0x68] sm:$0xf]  ;;  %v2115_v53 = vld [vmem:[%s2935_s1 + $0x74] sm:$0xf0]  ;;  %v2113_v54 = vld [vmem:[%s2935_s1 + $0x6c] sm:$0xf]  ;;  %v1879_v56 = vor.u32 %v2114_v48, %v1878_v47  ;;  %v1883_v57 = vor.u32 %v2112_v49, %v1880_v51 }
   0xe   :  { %656 = vmatpush.bf16.msra.mxu3 %v1923_v38  ;;  %v1888_v55 = vld [vmem:[%s2935_s1 + $0x78] sm:$0xf0]  ;;  %v1887_v58 = vor.u32 %v2115_v53, %v1886_v52  ;;  %v1862_v59 = vld [vmem:[%s2935_s1 + $0x40] sm:$0xf]  ;;  %v2110_v60 = vld [vmem:[%s2935_s1 + $0x4c] sm:$0xf0] }
   0xf   :  { %v2108_v61 = vld [vmem:[%s2935_s1 + $0x44] sm:$0xf]  ;;  %v1891_v62 = vor.u32 %v2113_v54, %v1888_v55  ;;  %v1864_v63 = vld [vmem:[%s2935_s1 + $0x50] sm:$0xf0]  ;;  %v1870_v0 = vld [vmem:[%s2935_s1 + $0x48] sm:$0xf]  ;;  %v1863_v4 = vor.u32 %v2110_v60, %v1862_v59 }
  0x10   :  { %390 = vmatpush.bf16.msra.mxu0 %v1895_v44  ;;  %v2111_v1 = vld [vmem:[%s2935_s1 + $0x54] sm:$0xf0]  ;;  %v2109_v2 = vld [vmem:[%s2935_s1 + $0x4c] sm:$0xf]  ;;  %v1872_v3 = vld [vmem:[%s2935_s1 + $0x58] sm:$0xf0]  ;;  %v1867_v5 = vor.u32 %v2108_v61, %v1864_v63 }
  0x11   :  { %479 = vmatpush.bf16.msra.mxu1 %v1899_v45  ;;  %568 = vmatpush.bf16.msra.mxu2 %v1903_v46  ;;  %v1871_v6 = vor.u32 %v2111_v1, %v1870_v0  ;;  %v1846_v7 = vld [vmem:[%s2935_s1 + $0x20] sm:$0xf]  ;;  %v2106_v8 = vld [vmem:[%s2935_s1 + $0x2c] sm:$0xf0]  ;;  %v2104_v9 = vld [vmem:[%s2935_s1 + $0x24] sm:$0xf]  ;;  %v1875_v10 = vor.u32 %v2109_v2, %v1872_v3 }
  0x12   :  { %657 = vmatpush.bf16.msra.mxu3 %v1907_v50  ;;  %v1848_v11 = vld [vmem:[%s2935_s1 + $0x30] sm:$0xf0]  ;;  %v1854_v12 = vld [vmem:[%s2935_s1 + $0x28] sm:$0xf]  ;;  %v2107_v13 = vld [vmem:[%s2935_s1 + $0x34] sm:$0xf0]  ;;  %v1847_v16 = vor.u32 %v2106_v8, %v1846_v7 }
  0x13   :  { %v2105_v14 = vld [vmem:[%s2935_s1 + $0x2c] sm:$0xf]  ;;  %v1856_v15 = vld [vmem:[%s2935_s1 + $0x38] sm:$0xf0]  ;;  %v1830_v17 = vld [vmem:[%s2935_s1] sm:$0xf]  ;;  %v1851_v18 = vor.u32 %v2104_v9, %v1848_v11  ;;  %v1855_v19 = vor.u32 %v2107_v13, %v1854_v12 }
  0x14   :  { %391 = vmatpush.bf16.msra.mxu0 %v1879_v56  ;;  %v2102_v20 = vld [vmem:[%s2935_s1 + $0xc] sm:$0xf0]  ;;  %v2100_v21 = vld [vmem:[%s2935_s1 + $0x4] sm:$0xf] }
  0x15   :  { %480 = vmatpush.bf16.msra.mxu1 %v1883_v57  ;;  %569 = vmatpush.bf16.msra.mxu2 %v1887_v58 }
  0x16   :  { %658 = vmatpush.bf16.msra.mxu3 %v1891_v62 }
  0x18   :  { %392 = vmatpush.bf16.msra.mxu0 %v1863_v4 }
  0x19   :  { %481 = vmatpush.bf16.msra.mxu1 %v1867_v5  ;;  %570 = vmatpush.bf16.msra.mxu2 %v1871_v6 }
  0x1a   :  { %10 = vsyncpa [#allocation4], 0  ;;  %659 = vmatpush.bf16.msra.mxu3 %v1875_v10  ;;  %v1859_v22 = vor.u32 %v2105_v14, %v1856_v15  ;;  %v1832_v23 = vld [vmem:[%s2935_s1 + $0x10] sm:$0xf0]  ;;  %v1838_v24 = vld [vmem:[%s2935_s1 + $0x8] sm:$0xf]  ;;  %v1831_v28 = vor.u32 %v2102_v20, %v1830_v17 }
  0x1b   :  { %v2103_v25 = vld [vmem:[%s2935_s1 + $0x14] sm:$0xf0]  ;;  %v2101_v26 = vld [vmem:[%s2935_s1 + $0xc] sm:$0xf]  ;;  %v1840_v27 = vld [vmem:[%s2935_s1 + $0x18] sm:$0xf0]  ;;  %v1835_v29 = vor.u32 %v2100_v21, %v1832_v23 }
  0x1c   :  { %393 = vmatpush.bf16.msra.mxu0 %v1847_v16  ;;  %v1839_v30 = vor.u32 %v2103_v25, %v1838_v24  ;;  %v1843_v31 = vor.u32 %v2101_v26, %v1840_v27  ;;  %v2155_v32 = vld [vmem:[%s2937_s3 + $0xb8] sm:$0xff]  ;;  %v2084_v33 = vld [vmem:[%s2934_s0] sm:$0xff]  ;;  %v2154_v37 = vld [vmem:[%s2937_s3 + $0xb0] sm:$0xff]  ;;  %s1752_s16 = sshll.u32 %s2939_s5, 4  ;;  %s2195_s17 = smov 128   ;;  %s1753_s16 = int_to_ptr.hbm [resolvable:$true] %s1752_s16 }
  0x1d   :  { %482 = vmatpush.bf16.msra.mxu1 %v1851_v18  ;;  %571 = vmatpush.bf16.msra.mxu2 %v1855_v19  ;;  %v2163_v34 = vld [vmem:[%s2937_s3 + $0xf8] sm:$0xff]  ;;  %v2162_v38 = vld [vmem:[%s2937_s3 + $0xf0] sm:$0xff]  ;;  %v2085_v41 = vld [vmem:[%s2934_s0 + $0x8] sm:$0xff]  ;;  %s2196_s18 = smov 8  }
  0x1e   :  { %660 = vmatpush.bf16.msra.mxu3 %v1859_v22  ;;  %v2139_v35 = vld [vmem:[%s2937_s3 + $0x38] sm:$0xff]  ;;  %v2138_v39 = vld [vmem:[%s2937_s3 + $0x30] sm:$0xff]  ;;  %v2153_v43 = vld [vmem:[%s2937_s3 + $0xa8] sm:$0xff] }
  0x1f   :  { %v2147_v36 = vld [vmem:[%s2937_s3 + $0x78] sm:$0xff]  ;;  %v2146_v40 = vld [vmem:[%s2937_s3 + $0x70] sm:$0xff]  ;;  %v2161_v44 = vld [vmem:[%s2937_s3 + $0xe8] sm:$0xff] }
  0x20   :  { %394 = vmatpush.bf16.msra.mxu0 %v1831_v28  ;;  %v2086_v42 = vld [vmem:[%s2934_s0 + $0x10] sm:$0xff]  ;;  %v2137_v45 = vld [vmem:[%s2937_s3 + $0x28] sm:$0xff]  ;;  %v2087_v47 = vld [vmem:[%s2934_s0 + $0x18] sm:$0xff] }
  0x21   :  { %483 = vmatpush.bf16.msra.mxu1 %v1835_v29  ;;  %572 = vmatpush.bf16.msra.mxu2 %v1839_v30  ;;  %v2145_v46 = vld [vmem:[%s2937_s3 + $0x68] sm:$0xff]  ;;  %v2088_v48 = vld [vmem:[%s2934_s0 + $0x20] sm:$0xff]  ;;  %v2090_v54 = vld [vmem:[%s2934_s0 + $0x30] sm:$0xff] }
  0x22   :  { %661 = vmatpush.bf16.msra.mxu3 %v1843_v31  ;;  %v2152_v49 = vld [vmem:[%s2937_s3 + $0xa0] sm:$0xff]  ;;  %v2089_v53 = vld [vmem:[%s2934_s0 + $0x28] sm:$0xff]  ;;  %v2151_v55 = vld [vmem:[%s2937_s3 + $0x98] sm:$0xff] }
  0x23   :  { %395 = vmatmul.bf16.vlgmr.msra.gmra.mxu0 %v2084_v33  ;;  %v2160_v50 = vld [vmem:[%s2937_s3 + $0xe0] sm:$0xff]  ;;  %v2159_v56 = vld [vmem:[%s2937_s3 + $0xd8] sm:$0xff]  ;;  %v2150_v2 = vld [vmem:[%s2937_s3 + $0x90] sm:$0xff] }
  0x24   :  { %484 = vmatmul.bf16.vlgmr.msra.gmra.mxu1 %v2084_v33  ;;  %573 = vmatmul.bf16.vlgmr.msra.gmra.mxu2 %v2084_v33  ;;  %v2136_v51 = vld [vmem:[%s2937_s3 + $0x20] sm:$0xff]  ;;  %v2135_v57 = vld [vmem:[%s2937_s3 + $0x18] sm:$0xff]  ;;  %v2158_v3 = vld [vmem:[%s2937_s3 + $0xd0] sm:$0xff] }
  0x25   :  { %1401 = vmatpush.bf16.msrb.mxu2 %v2155_v32  ;;  %662 = vmatmul.bf16.vlgmr.msra.gmra.mxu3 %v2084_v33  ;;  %v2144_v52 = vld [vmem:[%s2937_s3 + $0x60] sm:$0xff]  ;;  %v2143_v58 = vld [vmem:[%s2937_s3 + $0x58] sm:$0xff]  ;;  %v2134_v16 = vld [vmem:[%s2937_s3 + $0x10] sm:$0xff] }
  0x26   :  { %1490 = vmatpush.bf16.msrb.mxu3 %v2163_v34  ;;  %1223 = vmatpush.bf16.msrb.mxu0 %v2139_v35  ;;  %v2091_v59 = vld [vmem:[%s2934_s0 + $0x38] sm:$0xff]  ;;  %v2092_v60 = vld [vmem:[%s2934_s0 + $0x40] sm:$0xff]  ;;  %v2142_v17 = vld [vmem:[%s2937_s3 + $0x50] sm:$0xff] }
  0x27   :  { %1312 = vmatpush.bf16.msrb.mxu1 %v2147_v36  ;;  %v121_v61 = vld [vmem:[%s2936_s2] sm:$0xf]  ;;  %v2093_v25 = vld [vmem:[%s2934_s0 + $0x48] sm:$0xff] }
  0x28   :  { %v2509_v0 = vperm.slane %v121_v61, 0  ;;  %v2511_v1 = vperm.slane %v121_v61, 1  ;;  %v2522_v11 = vperm.slane %v121_v61, 2  ;;  %v2525_v14 = vperm.slane %v121_v61, 3 }
  0x29   :  { %1402 = vmatpush.bf16.msrb.mxu2 %v2154_v37 }
  0x2a   :  { %1491 = vmatpush.bf16.msrb.mxu3 %v2162_v38  ;;  %1224 = vmatpush.bf16.msrb.mxu0 %v2138_v39 }
  0x2b   :  { %1313 = vmatpush.bf16.msrb.mxu1 %v2146_v40 }
  0x2d   :  { %1403 = vmatpush.bf16.msrb.mxu2 %v2153_v43 }
  0x2e   :  { %1492 = vmatpush.bf16.msrb.mxu3 %v2161_v44  ;;  %1225 = vmatpush.bf16.msrb.mxu0 %v2137_v45 }
  0x2f   :  { %1314 = vmatpush.bf16.msrb.mxu1 %v2145_v46 }
  0x31   :  { %1404 = vmatpush.bf16.msrb.mxu2 %v2152_v49 }
  0x32   :  { %1493 = vmatpush.bf16.msrb.mxu3 %v2160_v50  ;;  %1226 = vmatpush.bf16.msrb.mxu0 %v2136_v51 }
  0x33   :  { %400 = vmatmul.bf16.gmra.mxu0 %v2085_v41  ;;  %1315 = vmatpush.bf16.msrb.mxu1 %v2144_v52 }
  0x34   :  { %489 = vmatmul.bf16.gmra.mxu1 %v2085_v41  ;;  %578 = vmatmul.bf16.gmra.mxu2 %v2085_v41 }
  0x35   :  { %667 = vmatmul.bf16.gmra.mxu3 %v2085_v41  ;;  %1405 = vmatpush.bf16.msrb.mxu2 %v2151_v55 }
  0x36   :  { %1494 = vmatpush.bf16.msrb.mxu3 %v2159_v56  ;;  %1227 = vmatpush.bf16.msrb.mxu0 %v2135_v57 }
  0x37   :  { %1316 = vmatpush.bf16.msrb.mxu1 %v2143_v58 }
  0x39   :  { %1406 = vmatpush.bf16.msrb.mxu2 %v2150_v2 }
  0x3a   :  { %1495 = vmatpush.bf16.msrb.mxu3 %v2158_v3  ;;  %1228 = vmatpush.bf16.msrb.mxu0 %v2134_v16  ;;  %v2149_v3 = vld [vmem:[%s2937_s3 + $0x88] sm:$0xff] }
  0x3b   :  { %1317 = vmatpush.bf16.msrb.mxu1 %v2142_v17 }
  0x3d   :  { %1407 = vmatpush.bf16.msrb.mxu2 %v2149_v3 }
  0x43   :  { %405 = vmatmul.bf16.gmra.mxu0 %v2086_v42 }
  0x44   :  { %494 = vmatmul.bf16.gmra.mxu1 %v2086_v42  ;;  %583 = vmatmul.bf16.gmra.mxu2 %v2086_v42 }
  0x45   :  { %672 = vmatmul.bf16.gmra.mxu3 %v2086_v42 }
  0x53   :  { %410 = vmatmul.bf16.gmra.mxu0 %v2087_v47 }
  0x54   :  { %499 = vmatmul.bf16.gmra.mxu1 %v2087_v47  ;;  %588 = vmatmul.bf16.gmra.mxu2 %v2087_v47 }
  0x55   :  { %677 = vmatmul.bf16.gmra.mxu3 %v2087_v47 }
  0x63   :  { %415 = vmatmul.bf16.gmra.mxu0 %v2088_v48 }
  0x64   :  { %504 = vmatmul.bf16.gmra.mxu1 %v2088_v48  ;;  %593 = vmatmul.bf16.gmra.mxu2 %v2088_v48 }
  0x65   :  { %682 = vmatmul.bf16.gmra.mxu3 %v2088_v48 }
  0x73   :  { %420 = vmatmul.bf16.gmra.mxu0 %v2089_v53 }
  0x74   :  { %509 = vmatmul.bf16.gmra.mxu1 %v2089_v53  ;;  %598 = vmatmul.bf16.gmra.mxu2 %v2089_v53 }
  0x75   :  { %687 = vmatmul.bf16.gmra.mxu3 %v2089_v53 }
  0x83   :  { %425 = vmatmul.bf16.gmra.mxu0 %v2090_v54 }
  0x84   :  { %514 = vmatmul.bf16.gmra.mxu1 %v2090_v54  ;;  %603 = vmatmul.bf16.gmra.mxu2 %v2090_v54 }
  0x85   :  { %692 = vmatmul.bf16.gmra.mxu3 %v2090_v54  ;;  %v2094_v54 = vld [vmem:[%s2934_s0 + $0x50] sm:$0xff] }
  0x93   :  { %430 = vmatmul.bf16.gmra.mxu0 %v2091_v59 }
  0x94   :  { %519 = vmatmul.bf16.gmra.mxu1 %v2091_v59  ;;  %608 = vmatmul.bf16.gmra.mxu2 %v2091_v59 }
  0x95   :  { %697 = vmatmul.bf16.gmra.mxu3 %v2091_v59 }
  0xa0   :  { %v396_v62 = vpop.f32.mrf.mxu0 }
  0xa1   :  { %v485_v63 = vpop.f32.mrf.mxu1  ;;  %v397_v4 = vadd.f32 %v396_v62, %v2509_v0 }
  0xa2   :  { %v486_v6 = vadd.f32 %v485_v63, %v2511_v1 }
  0xa3   :  { %435 = vmatmul.bf16.gmra.mxu0 %v2092_v60  ;;  %v743_v13 = vmax.f32 %v397_v4, 0.0  ;;  %v2157_v4 = vld [vmem:[%s2937_s3 + $0xc8] sm:$0xff] }
  0xa4   :  { %524 = vmatmul.bf16.gmra.mxu1 %v2092_v60  ;;  %613 = vmatmul.bf16.gmra.mxu2 %v2092_v60  ;;  %v744_v18 = vmax.f32 %v486_v6, 0.0 }
  0xa5   :  { %702 = vmatmul.bf16.gmra.mxu3 %v2092_v60 }
  0xa6   :  { %1496 = vmatpush.bf16.msrb.mxu3 %v2157_v4 }
  0xa7   :  { %v574_v5 = vpop.f32.mrf.mxu2 }
  0xa8   :  { %v663_v7 = vpop.f32.mrf.mxu3  ;;  %v398_v8 = vpop.f32.mrf.mxu0  ;;  %v575_v21 = vadd.f32 %v574_v5, %v2522_v11 }
  0xa9   :  { %v399_v9 = vadd.f32 %v398_v8, %v2509_v0  ;;  %v487_v10 = vpop.f32.mrf.mxu1  ;;  %v664_v23 = vadd.f32 %v663_v7, %v2525_v14 }
  0xaa   :  { %v488_v12 = vadd.f32 %v487_v10, %v2511_v1  ;;  %v745_v31 = vmax.f32 %v575_v21, 0.0 }
  0xab   :  { %v747_v15 = vmax.f32 %v399_v9, 0.0  ;;  %v746_v33 = vmax.f32 %v664_v23, 0.0 }
  0xac   :  { %v748_v19 = vmax.f32 %v488_v12, 0.0 }
  0xad   :  { %v2533_v20 = vpack.c.bf16 %v747_v15, %v743_v13 }
  0xae   :  { %v2536_v22 = vpack.c.bf16 %v748_v19, %v744_v18  ;;  %v2133_v18 = vld [vmem:[%s2937_s3 + $0x8] sm:$0xff] }
  0xaf   :  { %v576_v24 = vpop.f32.mrf.mxu2  ;;  %v2141_v19 = vld [vmem:[%s2937_s3 + $0x48] sm:$0xff]  ;;  %1229 = vmatpush.bf16.msrb.mxu0 %v2133_v18 }
  0xb0   :  { %v577_v26 = vadd.f32 %v576_v24, %v2522_v11  ;;  %v665_v27 = vpop.f32.mrf.mxu3  ;;  %v401_v28 = vpop.f32.mrf.mxu0  ;;  %1318 = vmatpush.bf16.msrb.mxu1 %v2141_v19 }
  0xb1   :  { %v666_v29 = vadd.f32 %v665_v27, %v2525_v14  ;;  %v490_v30 = vpop.f32.mrf.mxu1  ;;  %v402_v37 = vadd.f32 %v401_v28, %v2509_v0 }
  0xb2   :  { %v749_v32 = vmax.f32 %v577_v26, 0.0  ;;  %v491_v39 = vadd.f32 %v490_v30, %v2511_v1 }
  0xb3   :  { %v750_v34 = vmax.f32 %v666_v29, 0.0  ;;  %440 = vmatmul.bf16.gmra.mxu0 %v2093_v25  ;;  %v751_v45 = vmax.f32 %v402_v37, 0.0  ;;  %v2095_v29 = vld [vmem:[%s2934_s0 + $0x58] sm:$0xff] }
  0xb4   :  { %v2544_v35 = vpack.c.bf16 %v749_v32, %v745_v31  ;;  %529 = vmatmul.bf16.gmra.mxu1 %v2093_v25  ;;  %618 = vmatmul.bf16.gmra.mxu2 %v2093_v25  ;;  %v752_v47 = vmax.f32 %v491_v39, 0.0 }
  0xb5   :  { %v2546_v36 = vpack.c.bf16 %v750_v34, %v746_v33  ;;  %707 = vmatmul.bf16.gmra.mxu3 %v2093_v25 }
  0xb7   :  { %v579_v38 = vpop.f32.mrf.mxu2 }
  0xb8   :  { %v668_v40 = vpop.f32.mrf.mxu3  ;;  %v403_v41 = vpop.f32.mrf.mxu0  ;;  %v580_v50 = vadd.f32 %v579_v38, %v2522_v11 }
  0xb9   :  { %v404_v42 = vadd.f32 %v403_v41, %v2509_v0  ;;  %v492_v43 = vpop.f32.mrf.mxu1  ;;  %v669_v52 = vadd.f32 %v668_v40, %v2525_v14 }
  0xba   :  { %v493_v44 = vadd.f32 %v492_v43, %v2511_v1  ;;  %v753_v60 = vmax.f32 %v580_v50, 0.0 }
  0xbb   :  { %v755_v46 = vmax.f32 %v404_v42, 0.0  ;;  %v754_v62 = vmax.f32 %v669_v52, 0.0 }
  0xbc   :  { %v756_v48 = vmax.f32 %v493_v44, 0.0 }
  0xbd   :  { %v2552_v49 = vpack.c.bf16 %v755_v46, %v751_v45 }
  0xbe   :  { %v2555_v51 = vpack.c.bf16 %v756_v48, %v752_v47 }
  0xbf   :  { %v581_v53 = vpop.f32.mrf.mxu2 }
  0xc0   :  { %v582_v55 = vadd.f32 %v581_v53, %v2522_v11  ;;  %v670_v56 = vpop.f32.mrf.mxu3  ;;  %v406_v57 = vpop.f32.mrf.mxu0 }
  0xc1   :  { %v671_v58 = vadd.f32 %v670_v56, %v2525_v14  ;;  %v495_v59 = vpop.f32.mrf.mxu1  ;;  %v407_v6 = vadd.f32 %v406_v57, %v2509_v0 }
  0xc2   :  { %v757_v61 = vmax.f32 %v582_v55, 0.0  ;;  %v496_v8 = vadd.f32 %v495_v59, %v2511_v1 }
  0xc3   :  { %v758_v63 = vmax.f32 %v671_v58, 0.0  ;;  %445 = vmatmul.bf16.gmra.mxu0 %v2094_v54  ;;  %v759_v16 = vmax.f32 %v407_v6, 0.0 }
  0xc4   :  { %534 = vmatmul.bf16.gmra.mxu1 %v2094_v54  ;;  %623 = vmatmul.bf16.gmra.mxu2 %v2094_v54  ;;  %v2563_v2 = vpack.c.bf16 %v757_v61, %v753_v60  ;;  %v760_v21 = vmax.f32 %v496_v8, 0.0 }
  0xc5   :  { %712 = vmatmul.bf16.gmra.mxu3 %v2094_v54  ;;  %v2571_v5 = vpack.c.bf16 %v758_v63, %v754_v62  ;;  %v2096_v62 = vld [vmem:[%s2934_s0 + $0x60] sm:$0xff] }
  0xc7   :  { %v584_v7 = vpop.f32.mrf.mxu2 }
  0xc8   :  { %v673_v9 = vpop.f32.mrf.mxu3  ;;  %v408_v10 = vpop.f32.mrf.mxu0  ;;  %v585_v25 = vadd.f32 %v584_v7, %v2522_v11 }
  0xc9   :  { %v409_v12 = vadd.f32 %v408_v10, %v2509_v0  ;;  %v497_v13 = vpop.f32.mrf.mxu1  ;;  %v674_v27 = vadd.f32 %v673_v9, %v2525_v14 }
  0xca   :  { %v498_v15 = vadd.f32 %v497_v13, %v2511_v1  ;;  %v761_v37 = vmax.f32 %v585_v25, 0.0 }
  0xcb   :  { %v763_v17 = vmax.f32 %v409_v12, 0.0  ;;  %v762_v39 = vmax.f32 %v674_v27, 0.0 }
  0xcc   :  { %v764_v23 = vmax.f32 %v498_v15, 0.0  ;;  %v2148_v15 = vld [vmem:[%s2937_s3 + $0x80] sm:$0xff] }
  0xcd   :  { %v2583_v24 = vpack.c.bf16 %v763_v17, %v759_v16  ;;  %v2156_v16 = vld [vmem:[%s2937_s3 + $0xc0] sm:$0xff]  ;;  %1408 = vmatpush.bf16.msrb.mxu2 %v2148_v15 }
  0xce   :  { %v2586_v26 = vpack.c.bf16 %v764_v23, %v760_v21  ;;  %1497 = vmatpush.bf16.msrb.mxu3 %v2156_v16 }
  0xcf   :  { %v586_v28 = vpop.f32.mrf.mxu2 }
  0xd0   :  { %v587_v30 = vadd.f32 %v586_v28, %v2522_v11  ;;  %v675_v31 = vpop.f32.mrf.mxu3  ;;  %v411_v32 = vpop.f32.mrf.mxu0 }
  0xd1   :  { %v676_v33 = vadd.f32 %v675_v31, %v2525_v14  ;;  %v500_v34 = vpop.f32.mrf.mxu1  ;;  %v412_v43 = vadd.f32 %v411_v32, %v2509_v0  ;;  %v2132_v32 = vld [vmem:[%s2937_s3] sm:$0xff] }
  0xd2   :  { %v765_v38 = vmax.f32 %v587_v30, 0.0  ;;  %v501_v45 = vadd.f32 %v500_v34, %v2511_v1  ;;  %1230 = vmatpush.bf16.msrb.mxu0 %v2132_v32 }
  0xd3   :  { %v766_v40 = vmax.f32 %v676_v33, 0.0  ;;  %450 = vmatmul.bf16.gmra.mxu0 %v2095_v29  ;;  %v767_v53 = vmax.f32 %v412_v43, 0.0  ;;  %v2140_v33 = vld [vmem:[%s2937_s3 + $0x40] sm:$0xff] }
  0xd4   :  { %539 = vmatmul.bf16.gmra.mxu1 %v2095_v29  ;;  %628 = vmatmul.bf16.gmra.mxu2 %v2095_v29  ;;  %v2594_v41 = vpack.c.bf16 %v765_v38, %v761_v37  ;;  %v768_v55 = vmax.f32 %v501_v45, 0.0  ;;  %v2097_v45 = vld [vmem:[%s2934_s0 + $0x68] sm:$0xff] }
  0xd5   :  { %717 = vmatmul.bf16.gmra.mxu3 %v2095_v29  ;;  %v2596_v42 = vpack.c.bf16 %v766_v40, %v762_v39  ;;  %1319 = vmatpush.bf16.msrb.mxu1 %v2140_v33 }
  0xd7   :  { %v589_v44 = vpop.f32.mrf.mxu2 }
  0xd8   :  { %v678_v46 = vpop.f32.mrf.mxu3  ;;  %v413_v47 = vpop.f32.mrf.mxu0  ;;  %v590_v58 = vadd.f32 %v589_v44, %v2522_v11 }
  0xd9   :  { %v414_v48 = vadd.f32 %v413_v47, %v2509_v0  ;;  %v502_v50 = vpop.f32.mrf.mxu1  ;;  %v679_v60 = vadd.f32 %v678_v46, %v2525_v14 }
  0xda   :  { %v503_v52 = vadd.f32 %v502_v50, %v2511_v1  ;;  %v769_v8 = vmax.f32 %v590_v58, 0.0 }
  0xdb   :  { %v771_v54 = vmax.f32 %v414_v48, 0.0  ;;  %v770_v10 = vmax.f32 %v679_v60, 0.0 }
  0xdc   :  { %v772_v56 = vmax.f32 %v503_v52, 0.0 }
  0xdd   :  { %v2602_v57 = vpack.c.bf16 %v771_v54, %v767_v53 }
  0xde   :  { %v2605_v59 = vpack.c.bf16 %v772_v56, %v768_v55 }
  0xdf   :  { %v591_v61 = vpop.f32.mrf.mxu2 }
  0xe0   :  { %v592_v63 = vadd.f32 %v591_v61, %v2522_v11  ;;  %v680_v3 = vpop.f32.mrf.mxu3  ;;  %v416_v4 = vpop.f32.mrf.mxu0 }
  0xe1   :  { %v681_v6 = vadd.f32 %v680_v3, %v2525_v14  ;;  %v505_v7 = vpop.f32.mrf.mxu1  ;;  %v417_v18 = vadd.f32 %v416_v4, %v2509_v0 }
  0xe2   :  { %v773_v9 = vmax.f32 %v592_v63, 0.0  ;;  %v506_v21 = vadd.f32 %v505_v7, %v2511_v1 }
  0xe3   :  { %v774_v12 = vmax.f32 %v681_v6, 0.0  ;;  %455 = vmatmul.bf16.gmra.mxu0 %v2096_v62  ;;  %v775_v30 = vmax.f32 %v417_v18, 0.0 }
  0xe4   :  { %544 = vmatmul.bf16.gmra.mxu1 %v2096_v62  ;;  %633 = vmatmul.bf16.gmra.mxu2 %v2096_v62  ;;  %v2613_v13 = vpack.c.bf16 %v773_v9, %v769_v8  ;;  %v776_v34 = vmax.f32 %v506_v21, 0.0 }
  0xe5   :  { %722 = vmatmul.bf16.gmra.mxu3 %v2096_v62  ;;  %v2621_v17 = vpack.c.bf16 %v774_v12, %v770_v10 }
  0xe7   :  { %v594_v19 = vpop.f32.mrf.mxu2 }
  0xe8   :  { %v683_v23 = vpop.f32.mrf.mxu3  ;;  %v418_v25 = vpop.f32.mrf.mxu0  ;;  %v595_v39 = vadd.f32 %v594_v19, %v2522_v11 }
  0xe9   :  { %v419_v27 = vadd.f32 %v418_v25, %v2509_v0  ;;  %v507_v28 = vpop.f32.mrf.mxu1  ;;  %v684_v43 = vadd.f32 %v683_v23, %v2525_v14  ;;  %v2098_v25 = vld [vmem:[%s2934_s0 + $0x70] sm:$0xff] }
  0xea   :  { %v508_v29 = vadd.f32 %v507_v28, %v2511_v1  ;;  %v777_v53 = vmax.f32 %v595_v39, 0.0 }
  0xeb   :  { %v779_v31 = vmax.f32 %v419_v27, 0.0  ;;  %v778_v55 = vmax.f32 %v684_v43, 0.0 }
  0xec   :  { %v780_v37 = vmax.f32 %v508_v29, 0.0 }
  0xed   :  { %v2633_v38 = vpack.c.bf16 %v779_v31, %v775_v30 }
  0xee   :  { %v2636_v40 = vpack.c.bf16 %v780_v37, %v776_v34 }
  0xef   :  { %v596_v44 = vpop.f32.mrf.mxu2 }
  0xf0   :  { %v597_v46 = vadd.f32 %v596_v44, %v2522_v11  ;;  %v685_v47 = vpop.f32.mrf.mxu3  ;;  %v421_v48 = vpop.f32.mrf.mxu0 }
  0xf1   :  { %v686_v50 = vadd.f32 %v685_v47, %v2525_v14  ;;  %v510_v52 = vpop.f32.mrf.mxu1  ;;  %v422_v61 = vadd.f32 %v421_v48, %v2509_v0 }
  0xf2   :  { %v781_v54 = vmax.f32 %v597_v46, 0.0  ;;  %v511_v63 = vadd.f32 %v510_v52, %v2511_v1 }
  0xf3   :  { %v782_v56 = vmax.f32 %v686_v50, 0.0  ;;  %460 = vmatmul.bf16.gmra.mxu0 %v2097_v45  ;;  %v783_v9 = vmax.f32 %v422_v61, 0.0 }
  0xf4   :  { %549 = vmatmul.bf16.gmra.mxu1 %v2097_v45  ;;  %638 = vmatmul.bf16.gmra.mxu2 %v2097_v45  ;;  %v2644_v58 = vpack.c.bf16 %v781_v54, %v777_v53  ;;  %v784_v12 = vmax.f32 %v511_v63, 0.0 }
  0xf5   :  { %727 = vmatmul.bf16.gmra.mxu3 %v2097_v45  ;;  %v2646_v60 = vpack.c.bf16 %v782_v56, %v778_v55 }
  0xf7   :  { %v599_v62 = vpop.f32.mrf.mxu2 }
  0xf8   :  { %v688_v3 = vpop.f32.mrf.mxu3  ;;  %v423_v4 = vpop.f32.mrf.mxu0  ;;  %v600_v18 = vadd.f32 %v599_v62, %v2522_v11 }
  0xf9   :  { %v424_v6 = vadd.f32 %v423_v4, %v2509_v0  ;;  %v512_v7 = vpop.f32.mrf.mxu1  ;;  %v689_v21 = vadd.f32 %v688_v3, %v2525_v14 }
  0xfa   :  { %v513_v8 = vadd.f32 %v512_v7, %v2511_v1  ;;  %v785_v32 = vmax.f32 %v600_v18, 0.0  ;;  %v2099_v7 = vld [vmem:[%s2934_s0 + $0x78] sm:$0xff] }
  0xfb   :  { %v787_v10 = vmax.f32 %v424_v6, 0.0  ;;  %v786_v34 = vmax.f32 %v689_v21, 0.0 }
  0xfc   :  { %v788_v15 = vmax.f32 %v513_v8, 0.0 }
  0xfd   :  { %v2652_v16 = vpack.c.bf16 %v787_v10, %v783_v9 }
  0xfe   :  { %v2655_v19 = vpack.c.bf16 %v788_v15, %v784_v12 }
  0xff   :  { %v601_v23 = vpop.f32.mrf.mxu2 }
 0x100   :  { %v602_v27 = vadd.f32 %v601_v23, %v2522_v11  ;;  %v690_v28 = vpop.f32.mrf.mxu3  ;;  %v426_v29 = vpop.f32.mrf.mxu0 }
 0x101   :  { %v691_v30 = vadd.f32 %v690_v28, %v2525_v14  ;;  %v515_v31 = vpop.f32.mrf.mxu1  ;;  %v427_v44 = vadd.f32 %v426_v29, %v2509_v0 }
 0x102   :  { %v789_v33 = vmax.f32 %v602_v27, 0.0  ;;  %v516_v46 = vadd.f32 %v515_v31, %v2511_v1 }
 0x103   :  { %v790_v37 = vmax.f32 %v691_v30, 0.0  ;;  %465 = vmatmul.bf16.gmra.mxu0 %v2098_v25  ;;  %v791_v54 = vmax.f32 %v427_v44, 0.0 }
 0x104   :  { %554 = vmatmul.bf16.gmra.mxu1 %v2098_v25  ;;  %643 = vmatmul.bf16.gmra.mxu2 %v2098_v25  ;;  %v2663_v39 = vpack.c.bf16 %v789_v33, %v785_v32  ;;  %v792_v56 = vmax.f32 %v516_v46, 0.0 }
 0x105   :  { %732 = vmatmul.bf16.gmra.mxu3 %v2098_v25  ;;  %v2665_v43 = vpack.c.bf16 %v790_v37, %v786_v34 }
 0x107   :  { %v604_v45 = vpop.f32.mrf.mxu2 }
 0x108   :  { %v693_v47 = vpop.f32.mrf.mxu3  ;;  %v428_v48 = vpop.f32.mrf.mxu0  ;;  %v605_v63 = vadd.f32 %v604_v45, %v2522_v11 }
 0x109   :  { %v429_v50 = vadd.f32 %v428_v48, %v2509_v0  ;;  %v517_v52 = vpop.f32.mrf.mxu1  ;;  %v694_v4 = vadd.f32 %v693_v47, %v2525_v14 }
 0x10a   :  { %v518_v53 = vadd.f32 %v517_v52, %v2511_v1  ;;  %v793_v18 = vmax.f32 %v605_v63, 0.0 }
 0x10b   :  { %v795_v55 = vmax.f32 %v429_v50, 0.0  ;;  %v794_v23 = vmax.f32 %v694_v4, 0.0 }
 0x10c   :  { %v796_v61 = vmax.f32 %v518_v53, 0.0 }
 0x10d   :  { %v2671_v62 = vpack.c.bf16 %v795_v55, %v791_v54 }
 0x10e   :  { %v2674_v3 = vpack.c.bf16 %v796_v61, %v792_v56 }
 0x10f   :  { %v606_v6 = vpop.f32.mrf.mxu2 }
 0x110   :  { %v607_v8 = vadd.f32 %v606_v6, %v2522_v11  ;;  %v695_v9 = vpop.f32.mrf.mxu3  ;;  %v431_v10 = vpop.f32.mrf.mxu0 }
 0x111   :  { %v696_v12 = vadd.f32 %v695_v9, %v2525_v14  ;;  %v520_v15 = vpop.f32.mrf.mxu1  ;;  %v432_v29 = vadd.f32 %v431_v10, %v2509_v0 }
 0x112   :  { %v797_v21 = vmax.f32 %v607_v8, 0.0  ;;  %v521_v31 = vadd.f32 %v520_v15, %v2511_v1 }
 0x113   :  { %v798_v25 = vmax.f32 %v696_v12, 0.0  ;;  %470 = vmatmul.bf16.gmra.mxu0 %v2099_v7  ;;  %v799_v45 = vmax.f32 %v432_v29, 0.0 }
 0x114   :  { %559 = vmatmul.bf16.gmra.mxu1 %v2099_v7  ;;  %648 = vmatmul.bf16.gmra.mxu2 %v2099_v7  ;;  %v2682_v27 = vpack.c.bf16 %v797_v21, %v793_v18  ;;  %v800_v47 = vmax.f32 %v521_v31, 0.0 }
 0x115   :  { %737 = vmatmul.bf16.gmra.mxu3 %v2099_v7  ;;  %v2684_v28 = vpack.c.bf16 %v798_v25, %v794_v23 }
 0x117   :  { %v609_v30 = vpop.f32.mrf.mxu2 }
 0x118   :  { %v698_v32 = vpop.f32.mrf.mxu3  ;;  %v433_v33 = vpop.f32.mrf.mxu0  ;;  %v610_v52 = vadd.f32 %v609_v30, %v2522_v11 }
 0x119   :  { %v434_v34 = vadd.f32 %v433_v33, %v2509_v0  ;;  %v522_v37 = vpop.f32.mrf.mxu1  ;;  %v699_v54 = vadd.f32 %v698_v32, %v2525_v14 }
 0x11a   :  { %v523_v44 = vadd.f32 %v522_v37, %v2511_v1  ;;  %v801_v7 = vmax.f32 %v610_v52, 0.0 }
 0x11b   :  { %v803_v46 = vmax.f32 %v434_v34, 0.0  ;;  %v802_v9 = vmax.f32 %v699_v54, 0.0 }
 0x11c   :  { %v804_v48 = vmax.f32 %v523_v44, 0.0 }
 0x11d   :  { %v2690_v50 = vpack.c.bf16 %v803_v46, %v799_v45 }
 0x11e   :  { %v2693_v53 = vpack.c.bf16 %v804_v48, %v800_v47 }
 0x11f   :  { %v611_v55 = vpop.f32.mrf.mxu2 }
 0x120   :  { %v612_v56 = vadd.f32 %v611_v55, %v2522_v11  ;;  %v700_v61 = vpop.f32.mrf.mxu3  ;;  %v436_v63 = vpop.f32.mrf.mxu0 }
 0x121   :  { %v701_v4 = vadd.f32 %v700_v61, %v2525_v14  ;;  %v525_v6 = vpop.f32.mrf.mxu1  ;;  %v437_v18 = vadd.f32 %v436_v63, %v2509_v0 }
 0x122   :  { %v805_v8 = vmax.f32 %v612_v56, 0.0  ;;  %v526_v23 = vadd.f32 %v525_v6, %v2511_v1 }
 0x123   :  { %v806_v10 = vmax.f32 %v701_v4, 0.0  ;;  %1231 = vmatmul.bf16.vlgmr.msrb.gmra.mxu0 %v2533_v20  ;;  %v807_v31 = vmax.f32 %v437_v18, 0.0 }
 0x124   :  { %1320 = vmatmul.bf16.vlgmr.msrb.gmra.mxu1 %v2536_v22  ;;  %1409 = vmatmul.bf16.vlgmr.msrb.gmra.mxu2 %v2544_v35  ;;  %v2701_v12 = vpack.c.bf16 %v805_v8, %v801_v7  ;;  %v808_v32 = vmax.f32 %v526_v23, 0.0 }
 0x125   :  { %1498 = vmatmul.bf16.vlgmr.msrb.gmra.mxu3 %v2546_v36  ;;  %v2704_v15 = vpack.c.bf16 %v806_v10, %v802_v9 }
 0x127   :  { %v614_v21 = vpop.f32.mrf.mxu2 }
 0x128   :  { %v703_v25 = vpop.f32.mrf.mxu3  ;;  %v438_v29 = vpop.f32.mrf.mxu0  ;;  %v615_v36 = vadd.f32 %v614_v21, %v2522_v11 }
 0x129   :  { %v439_v30 = vadd.f32 %v438_v29, %v2509_v0  ;;  %v527_v20 = vpop.f32.mrf.mxu1  ;;  %v704_v44 = vadd.f32 %v703_v25, %v2525_v14 }
 0x12a   :  { %v528_v22 = vadd.f32 %v527_v20, %v2511_v1  ;;  %v809_v55 = vmax.f32 %v615_v36, 0.0 }
 0x12b   :  { %v811_v35 = vmax.f32 %v439_v30, 0.0  ;;  %v810_v61 = vmax.f32 %v704_v44, 0.0 }
 0x12c   :  { %v812_v33 = vmax.f32 %v528_v22, 0.0 }
 0x12d   :  { %v2710_v34 = vpack.c.bf16 %v811_v35, %v807_v31 }
 0x12e   :  { %v2713_v37 = vpack.c.bf16 %v812_v33, %v808_v32 }
 0x12f   :  { %v616_v45 = vpop.f32.mrf.mxu2 }
 0x130   :  { %v617_v46 = vadd.f32 %v616_v45, %v2522_v11  ;;  %v705_v47 = vpop.f32.mrf.mxu3  ;;  %v441_v48 = vpop.f32.mrf.mxu0 }
 0x131   :  { %v706_v52 = vadd.f32 %v705_v47, %v2525_v14  ;;  %v530_v54 = vpop.f32.mrf.mxu1  ;;  %v442_v7 = vadd.f32 %v441_v48, %v2509_v0 }
 0x132   :  { %v813_v56 = vmax.f32 %v617_v46, 0.0  ;;  %v531_v9 = vadd.f32 %v530_v54, %v2511_v1 }
 0x133   :  { %v814_v63 = vmax.f32 %v706_v52, 0.0  ;;  %1236 = vmatmul.bf16.gmra.mxu0 %v2552_v49  ;;  %v815_v23 = vmax.f32 %v442_v7, 0.0 }
 0x134   :  { %1325 = vmatmul.bf16.gmra.mxu1 %v2555_v51  ;;  %1414 = vmatmul.bf16.gmra.mxu2 %v2563_v2  ;;  %v2721_v4 = vpack.c.bf16 %v813_v56, %v809_v55  ;;  %v816_v25 = vmax.f32 %v531_v9, 0.0 }
 0x135   :  { %1503 = vmatmul.bf16.gmra.mxu3 %v2571_v5  ;;  %v2724_v6 = vpack.c.bf16 %v814_v63, %v810_v61 }
 0x137   :  { %v619_v8 = vpop.f32.mrf.mxu2 }
 0x138   :  { %v708_v10 = vpop.f32.mrf.mxu3  ;;  %v443_v18 = vpop.f32.mrf.mxu0  ;;  %v620_v5 = vadd.f32 %v619_v8, %v2522_v11 }
 0x139   :  { %v444_v21 = vadd.f32 %v443_v18, %v2509_v0  ;;  %v532_v49 = vpop.f32.mrf.mxu1  ;;  %v709_v22 = vadd.f32 %v708_v10, %v2525_v14 }
 0x13a   :  { %v533_v51 = vadd.f32 %v532_v49, %v2511_v1  ;;  %v817_v45 = vmax.f32 %v620_v5, 0.0 }
 0x13b   :  { %v819_v2 = vmax.f32 %v444_v21, 0.0  ;;  %v818_v47 = vmax.f32 %v709_v22, 0.0 }
 0x13c   :  { %v820_v29 = vmax.f32 %v533_v51, 0.0 }
 0x13d   :  { %v2730_v30 = vpack.c.bf16 %v819_v2, %v815_v23 }
 0x13e   :  { %v2733_v20 = vpack.c.bf16 %v820_v29, %v816_v25 }
 0x13f   :  { %v621_v31 = vpop.f32.mrf.mxu2 }
 0x140   :  { %v622_v35 = vadd.f32 %v621_v31, %v2522_v11  ;;  %v710_v32 = vpop.f32.mrf.mxu3  ;;  %v446_v33 = vpop.f32.mrf.mxu0 }
 0x141   :  { %v711_v36 = vadd.f32 %v710_v32, %v2525_v14  ;;  %v535_v44 = vpop.f32.mrf.mxu1  ;;  %v447_v55 = vadd.f32 %v446_v33, %v2509_v0 }
 0x142   :  { %v821_v46 = vmax.f32 %v622_v35, 0.0  ;;  %v536_v61 = vadd.f32 %v535_v44, %v2511_v1 }
 0x143   :  { %v822_v48 = vmax.f32 %v711_v36, 0.0  ;;  %1241 = vmatmul.bf16.gmra.mxu0 %v2583_v24  ;;  %v823_v9 = vmax.f32 %v447_v55, 0.0 }
 0x144   :  { %1330 = vmatmul.bf16.gmra.mxu1 %v2586_v26  ;;  %1419 = vmatmul.bf16.gmra.mxu2 %v2594_v41  ;;  %v2741_v52 = vpack.c.bf16 %v821_v46, %v817_v45  ;;  %v824_v10 = vmax.f32 %v536_v61, 0.0 }
 0x145   :  { %1508 = vmatmul.bf16.gmra.mxu3 %v2596_v42  ;;  %v2744_v54 = vpack.c.bf16 %v822_v48, %v818_v47 }
 0x147   :  { %v624_v56 = vpop.f32.mrf.mxu2 }
 0x148   :  { %v713_v63 = vpop.f32.mrf.mxu3  ;;  %v448_v7 = vpop.f32.mrf.mxu0  ;;  %v625_v42 = vadd.f32 %v624_v56, %v2522_v11 }
 0x149   :  { %v449_v8 = vadd.f32 %v448_v7, %v2509_v0  ;;  %v537_v24 = vpop.f32.mrf.mxu1  ;;  %v714_v51 = vadd.f32 %v713_v63, %v2525_v14 }
 0x14a   :  { %v538_v26 = vadd.f32 %v537_v24, %v2511_v1  ;;  %v825_v31 = vmax.f32 %v625_v42, 0.0 }
 0x14b   :  { %v827_v41 = vmax.f32 %v449_v8, 0.0  ;;  %v826_v32 = vmax.f32 %v714_v51, 0.0 }
 0x14c   :  { %v828_v18 = vmax.f32 %v538_v26, 0.0 }
 0x14d   :  { %v2750_v21 = vpack.c.bf16 %v827_v41, %v823_v9 }
 0x14e   :  { %v2753_v49 = vpack.c.bf16 %v828_v18, %v824_v10 }
 0x14f   :  { %v626_v23 = vpop.f32.mrf.mxu2 }
 0x150   :  { %v627_v2 = vadd.f32 %v626_v23, %v2522_v11  ;;  %v715_v25 = vpop.f32.mrf.mxu3  ;;  %v451_v29 = vpop.f32.mrf.mxu0 }
 0x151   :  { %v716_v5 = vadd.f32 %v715_v25, %v2525_v14  ;;  %v540_v22 = vpop.f32.mrf.mxu1  ;;  %v452_v45 = vadd.f32 %v451_v29, %v2509_v0 }
 0x152   :  { %v829_v35 = vmax.f32 %v627_v2, 0.0  ;;  %v541_v47 = vadd.f32 %v540_v22, %v2511_v1 }
 0x153   :  { %v830_v33 = vmax.f32 %v716_v5, 0.0  ;;  %1246 = vmatmul.bf16.gmra.mxu0 %v2602_v57  ;;  %v831_v61 = vmax.f32 %v452_v45, 0.0 }
 0x154   :  { %1335 = vmatmul.bf16.gmra.mxu1 %v2605_v59  ;;  %1424 = vmatmul.bf16.gmra.mxu2 %v2613_v13  ;;  %v2761_v36 = vpack.c.bf16 %v829_v35, %v825_v31  ;;  %v832_v63 = vmax.f32 %v541_v47, 0.0 }
 0x155   :  { %1513 = vmatmul.bf16.gmra.mxu3 %v2621_v17  ;;  %v2764_v44 = vpack.c.bf16 %v830_v33, %v826_v32 }
 0x157   :  { %v629_v46 = vpop.f32.mrf.mxu2 }
 0x158   :  { %v718_v48 = vpop.f32.mrf.mxu3  ;;  %v453_v55 = vpop.f32.mrf.mxu0  ;;  %v630_v17 = vadd.f32 %v629_v46, %v2522_v11 }
 0x159   :  { %v454_v56 = vadd.f32 %v453_v55, %v2509_v0  ;;  %v542_v57 = vpop.f32.mrf.mxu1  ;;  %v719_v26 = vadd.f32 %v718_v48, %v2525_v14 }
 0x15a   :  { %v543_v59 = vadd.f32 %v542_v57, %v2511_v1  ;;  %v833_v23 = vmax.f32 %v630_v17, 0.0 }
 0x15b   :  { %v835_v13 = vmax.f32 %v454_v56, 0.0  ;;  %v834_v25 = vmax.f32 %v719_v26, 0.0 }
 0x15c   :  { %v836_v7 = vmax.f32 %v543_v59, 0.0 }
 0x15d   :  { %v2770_v8 = vpack.c.bf16 %v835_v13, %v831_v61 }
 0x15e   :  { %v2773_v24 = vpack.c.bf16 %v836_v7, %v832_v63 }
 0x15f   :  { %v631_v9 = vpop.f32.mrf.mxu2 }
 0x160   :  { %v632_v41 = vadd.f32 %v631_v9, %v2522_v11  ;;  %v720_v10 = vpop.f32.mrf.mxu3  ;;  %v456_v18 = vpop.f32.mrf.mxu0 }
 0x161   :  { %v721_v42 = vadd.f32 %v720_v10, %v2525_v14  ;;  %v545_v51 = vpop.f32.mrf.mxu1  ;;  %v457_v31 = vadd.f32 %v456_v18, %v2509_v0 }
 0x162   :  { %v837_v2 = vmax.f32 %v632_v41, 0.0  ;;  %v546_v32 = vadd.f32 %v545_v51, %v2511_v1 }
 0x163   :  { %v838_v29 = vmax.f32 %v721_v42, 0.0  ;;  %1251 = vmatmul.bf16.gmra.mxu0 %v2633_v38  ;;  %v839_v47 = vmax.f32 %v457_v31, 0.0 }
 0x164   :  { %1340 = vmatmul.bf16.gmra.mxu1 %v2636_v40  ;;  %1429 = vmatmul.bf16.gmra.mxu2 %v2644_v58  ;;  %v2781_v5 = vpack.c.bf16 %v837_v2, %v833_v23  ;;  %v840_v48 = vmax.f32 %v546_v32, 0.0 }
 0x165   :  { %1518 = vmatmul.bf16.gmra.mxu3 %v2646_v60  ;;  %v2784_v22 = vpack.c.bf16 %v838_v29, %v834_v25 }
 0x167   :  { %v634_v35 = vpop.f32.mrf.mxu2 }
 0x168   :  { %v723_v33 = vpop.f32.mrf.mxu3  ;;  %v458_v45 = vpop.f32.mrf.mxu0  ;;  %v635_v60 = vadd.f32 %v634_v35, %v2522_v11 }
 0x169   :  { %v459_v46 = vadd.f32 %v458_v45, %v2509_v0  ;;  %v547_v38 = vpop.f32.mrf.mxu1  ;;  %v724_v59 = vadd.f32 %v723_v33, %v2525_v14 }
 0x16a   :  { %v548_v40 = vadd.f32 %v547_v38, %v2511_v1  ;;  %v841_v9 = vmax.f32 %v635_v60, 0.0 }
 0x16b   :  { %v843_v58 = vmax.f32 %v459_v46, 0.0  ;;  %v842_v10 = vmax.f32 %v724_v59, 0.0 }
 0x16c   :  { %v844_v55 = vmax.f32 %v548_v40, 0.0 }
 0x16d   :  { %v2790_v56 = vpack.c.bf16 %v843_v58, %v839_v47 }
 0x16e   :  { %v2793_v57 = vpack.c.bf16 %v844_v55, %v840_v48 }
 0x16f   :  { %v636_v61 = vpop.f32.mrf.mxu2 }
 0x170   :  { %v637_v13 = vadd.f32 %v636_v61, %v2522_v11  ;;  %v725_v63 = vpop.f32.mrf.mxu3  ;;  %v461_v7 = vpop.f32.mrf.mxu0 }
 0x171   :  { %v726_v17 = vadd.f32 %v725_v63, %v2525_v14  ;;  %v550_v26 = vpop.f32.mrf.mxu1  ;;  %v462_v23 = vadd.f32 %v461_v7, %v2509_v0 }
 0x172   :  { %v845_v41 = vmax.f32 %v637_v13, 0.0  ;;  %v551_v25 = vadd.f32 %v550_v26, %v2511_v1 }
 0x173   :  { %v846_v18 = vmax.f32 %v726_v17, 0.0  ;;  %1256 = vmatmul.bf16.gmra.mxu0 %v2652_v16  ;;  %v847_v32 = vmax.f32 %v462_v23, 0.0 }
 0x174   :  { %1345 = vmatmul.bf16.gmra.mxu1 %v2655_v19  ;;  %1434 = vmatmul.bf16.gmra.mxu2 %v2663_v39  ;;  %v2801_v42 = vpack.c.bf16 %v845_v41, %v841_v9  ;;  %v848_v33 = vmax.f32 %v551_v25, 0.0 }
 0x175   :  { %1523 = vmatmul.bf16.gmra.mxu3 %v2665_v43  ;;  %v2804_v51 = vpack.c.bf16 %v846_v18, %v842_v10 }
 0x177   :  { %v639_v2 = vpop.f32.mrf.mxu2 }
 0x178   :  { %v728_v29 = vpop.f32.mrf.mxu3  ;;  %v463_v31 = vpop.f32.mrf.mxu0  ;;  %v640_v43 = vadd.f32 %v639_v2, %v2522_v11 }
 0x179   :  { %v464_v35 = vadd.f32 %v463_v31, %v2509_v0  ;;  %v552_v16 = vpop.f32.mrf.mxu1  ;;  %v729_v40 = vadd.f32 %v728_v29, %v2525_v14 }
 0x17a   :  { %v553_v19 = vadd.f32 %v552_v16, %v2511_v1  ;;  %v849_v61 = vmax.f32 %v640_v43, 0.0 }
 0x17b   :  { %v851_v39 = vmax.f32 %v464_v35, 0.0  ;;  %v850_v63 = vmax.f32 %v729_v40, 0.0 }
 0x17c   :  { %v852_v45 = vmax.f32 %v553_v19, 0.0 }
 0x17d   :  { %v2810_v46 = vpack.c.bf16 %v851_v39, %v847_v32 }
 0x17e   :  { %v2813_v38 = vpack.c.bf16 %v852_v45, %v848_v33 }
 0x17f   :  { %v641_v47 = vpop.f32.mrf.mxu2 }
 0x180   :  { %v642_v58 = vadd.f32 %v641_v47, %v2522_v11  ;;  %v730_v48 = vpop.f32.mrf.mxu3  ;;  %v466_v55 = vpop.f32.mrf.mxu0 }
 0x181   :  { %v731_v60 = vadd.f32 %v730_v48, %v2525_v14  ;;  %v555_v59 = vpop.f32.mrf.mxu1  ;;  %v467_v9 = vadd.f32 %v466_v55, %v2509_v0 }
 0x182   :  { %v853_v13 = vmax.f32 %v642_v58, 0.0  ;;  %v556_v10 = vadd.f32 %v555_v59, %v2511_v1 }
 0x183   :  { %v854_v7 = vmax.f32 %v731_v60, 0.0  ;;  %1261 = vmatmul.bf16.gmra.mxu0 %v2671_v62  ;;  %v855_v25 = vmax.f32 %v467_v9, 0.0 }
 0x184   :  { %1350 = vmatmul.bf16.gmra.mxu1 %v2674_v3  ;;  %1439 = vmatmul.bf16.gmra.mxu2 %v2682_v27  ;;  %v2821_v17 = vpack.c.bf16 %v853_v13, %v849_v61  ;;  %v856_v29 = vmax.f32 %v556_v10, 0.0 }
 0x185   :  { %1528 = vmatmul.bf16.gmra.mxu3 %v2684_v28  ;;  %v2824_v26 = vpack.c.bf16 %v854_v7, %v850_v63 }
 0x187   :  { %v644_v41 = vpop.f32.mrf.mxu2 }
 0x188   :  { %v733_v18 = vpop.f32.mrf.mxu3  ;;  %v468_v23 = vpop.f32.mrf.mxu0  ;;  %v645_v28 = vadd.f32 %v644_v41, %v2522_v11 }
 0x189   :  { %v469_v2 = vadd.f32 %v468_v23, %v2509_v0  ;;  %v557_v62 = vpop.f32.mrf.mxu1  ;;  %v734_v19 = vadd.f32 %v733_v18, %v2525_v14 }
 0x18a   :  { %v558_v3 = vadd.f32 %v557_v62, %v2511_v1  ;;  %v857_v47 = vmax.f32 %v645_v28, 0.0 }
 0x18b   :  { %v859_v27 = vmax.f32 %v469_v2, 0.0  ;;  %v858_v48 = vmax.f32 %v734_v19, 0.0 }
 0x18c   :  { %v860_v31 = vmax.f32 %v558_v3, 0.0 }
 0x18d   :  { %v2830_v35 = vpack.c.bf16 %v859_v27, %v855_v25 }
 0x18e   :  { %v2833_v16 = vpack.c.bf16 %v860_v31, %v856_v29 }
 0x18f   :  { %v646_v32 = vpop.f32.mrf.mxu2 }
 0x190   :  { %v647_v39 = vadd.f32 %v646_v32, %v2522_v11  ;;  %v735_v33 = vpop.f32.mrf.mxu3  ;;  %v471_v45 = vpop.f32.mrf.mxu0 }
 0x191   :  { %v736_v43 = vadd.f32 %v735_v33, %v2525_v14  ;;  %v560_v40 = vpop.f32.mrf.mxu1  ;;  %v472_v61 = vadd.f32 %v471_v45, %v2509_v0 }
 0x192   :  { %v861_v58 = vmax.f32 %v647_v39, 0.0  ;;  %v561_v63 = vadd.f32 %v560_v40, %v2511_v1 }
 0x193   :  { %v862_v55 = vmax.f32 %v736_v43, 0.0  ;;  %1266 = vmatmul.bf16.gmra.mxu0 %v2690_v50  ;;  %v863_v10 = vmax.f32 %v472_v61, 0.0 }
 0x194   :  { %1355 = vmatmul.bf16.gmra.mxu1 %v2693_v53  ;;  %1444 = vmatmul.bf16.gmra.mxu2 %v2701_v12  ;;  %v2841_v60 = vpack.c.bf16 %v861_v58, %v857_v47  ;;  %v864_v18 = vmax.f32 %v561_v63, 0.0  ;;  %v2869_v47 = vld [vmem:[%s2938_s4] ss:$0 sm:$0xff]  ;;  %s2194_s4 = smov [#allocation3]  }
 0x195   :  { %1533 = vmatmul.bf16.gmra.mxu3 %v2704_v15  ;;  %v2844_v59 = vpack.c.bf16 %v862_v55, %v858_v48  ;;  %s1750_s13 = sshll.u32 %s2194_s4, 4  ;;  %s1751_s13 = int_to_ptr.vmem [resolvable:$true] %s1750_s13 }
 0x197   :  { %v649_v13 = vpop.f32.mrf.mxu2 }
 0x198   :  { %v738_v7 = vpop.f32.mrf.mxu3  ;;  %v473_v9 = vpop.f32.mrf.mxu0  ;;  %v650_v15 = vadd.f32 %v649_v13, %v2522_v11 }
 0x199   :  { %v474_v41 = vadd.f32 %v473_v9, %v2509_v0  ;;  %v562_v50 = vpop.f32.mrf.mxu1  ;;  %v739_v3 = vadd.f32 %v738_v7, %v2525_v14 }
 0x19a   :  { %v563_v53 = vadd.f32 %v562_v50, %v2511_v1  ;;  %v865_v28 = vmax.f32 %v650_v15, 0.0 }
 0x19b   :  { %v867_v12 = vmax.f32 %v474_v41, 0.0  ;;  %v866_v32 = vmax.f32 %v739_v3, 0.0 }
 0x19c   :  { %v868_v23 = vmax.f32 %v563_v53, 0.0 }
 0x19d   :  { %v2850_v2 = vpack.c.bf16 %v867_v12, %v863_v10 }
 0x19e   :  { %v2853_v62 = vpack.c.bf16 %v868_v23, %v864_v18 }
 0x19f   :  { %v651_v25 = vpop.f32.mrf.mxu2 }
 0x1a0   :  { %v652_v27 = vadd.f32 %v651_v25, %v2522_v11  ;;  %v740_v29 = vpop.f32.mrf.mxu3  ;;  %v1232_v0 = vpop.f32.mrf.mxu0 }
 0x1a1   :  { %v741_v31 = vadd.f32 %v740_v29, %v2525_v14  ;;  %v1321_v1 = vpop.f32.mrf.mxu1 }
 0x1a2   :  { %v869_v19 = vmax.f32 %v652_v27, 0.0  ;;  %v1322_v45 = vadd.f32 %v1321_v1, %v1232_v0 }
 0x1a3   :  { %v870_v39 = vmax.f32 %v741_v31, 0.0  ;;  %1271 = vmatmul.bf16.gmra.mxu0 %v2710_v34 }
 0x1a4   :  { %1360 = vmatmul.bf16.gmra.mxu1 %v2713_v37  ;;  %1449 = vmatmul.bf16.gmra.mxu2 %v2721_v4  ;;  %v2861_v33 = vpack.c.bf16 %v869_v19, %v865_v28 }
 0x1a5   :  { %1538 = vmatmul.bf16.gmra.mxu3 %v2724_v6  ;;  %v2864_v11 = vpack.c.bf16 %v870_v39, %v866_v32 }
 0x1a7   :  { %v1410_v43 = vpop.f32.mrf.mxu2 }
 0x1a8   :  { %v1411_v14 = vadd.f32 %v1410_v43, %v1322_v45  ;;  %v1499_v40 = vpop.f32.mrf.mxu3  ;;  %v1234_v34 = vpop.f32.mrf.mxu0 }
 0x1a9   :  { %v1323_v58 = vpop.f32.mrf.mxu1 }
 0x1aa   :  { %v1500_v37 = vadd.f32 %v1499_v40, %v1411_v14  ;;  %v1324_v48 = vadd.f32 %v1323_v58, %v1234_v34 }
 0x1ac   :  { %v1682_v4 = vadd.f32 %v2869_v47, %v1500_v37 }
 0x1ae   :  { %1714 = vst [vmem:[#allocation3] sm:$0xff] %v1682_v4 }
 0x1af   :  { %v1412_v55 = vpop.f32.mrf.mxu2 }
 0x1b0   :  { %v1413_v6 = vadd.f32 %v1412_v55, %v1324_v48  ;;  %v1501_v61 = vpop.f32.mrf.mxu3  ;;  %v1237_v13 = vpop.f32.mrf.mxu0 }
 0x1b1   :  { %v1326_v63 = vpop.f32.mrf.mxu1 }
 0x1b2   :  { %v1502_v7 = vadd.f32 %v1501_v61, %v1413_v6  ;;  %v1327_v41 = vadd.f32 %v1326_v63, %v1237_v13 }
 0x1b3   :  { %1276 = vmatmul.bf16.gmra.mxu0 %v2730_v30 }
 0x1b4   :  { %v1683_v9 = vadd.f32 %v2869_v47, %v1502_v7  ;;  %1365 = vmatmul.bf16.gmra.mxu1 %v2733_v20  ;;  %1454 = vmatmul.bf16.gmra.mxu2 %v2741_v52 }
 0x1b5   :  { %1543 = vmatmul.bf16.gmra.mxu3 %v2744_v54 }
 0x1b6   :  { %1715 = vst [vmem:[#allocation3 + $0x8] sm:$0xff] %v1683_v9 }
 0x1b7   :  { %v1415_v50 = vpop.f32.mrf.mxu2 }
 0x1b8   :  { %v1416_v53 = vadd.f32 %v1415_v50, %v1327_v41  ;;  %v1504_v10 = vpop.f32.mrf.mxu3  ;;  %v1239_v12 = vpop.f32.mrf.mxu0 }
 0x1b9   :  { %v1328_v18 = vpop.f32.mrf.mxu1 }
 0x1ba   :  { %v1505_v23 = vadd.f32 %v1504_v10, %v1416_v53  ;;  %v1329_v30 = vadd.f32 %v1328_v18, %v1239_v12 }
 0x1bc   :  { %v1684_v15 = vadd.f32 %v2869_v47, %v1505_v23 }
 0x1be   :  { %1716 = vst [vmem:[#allocation3 + $0x10] sm:$0xff] %v1684_v15 }
 0x1bf   :  { %v1417_v3 = vpop.f32.mrf.mxu2 }
 0x1c0   :  { %v1418_v25 = vadd.f32 %v1417_v3, %v1329_v30  ;;  %v1506_v27 = vpop.f32.mrf.mxu3  ;;  %v1242_v20 = vpop.f32.mrf.mxu0 }
 0x1c1   :  { %v1331_v29 = vpop.f32.mrf.mxu1 }
 0x1c2   :  { %v1507_v52 = vadd.f32 %v1506_v27, %v1418_v25  ;;  %v1332_v0 = vadd.f32 %v1331_v29, %v1242_v20 }
 0x1c3   :  { %1281 = vmatmul.bf16.gmra.mxu0 %v2750_v21 }
 0x1c4   :  { %v1685_v54 = vadd.f32 %v2869_v47, %v1507_v52  ;;  %1370 = vmatmul.bf16.gmra.mxu1 %v2753_v49  ;;  %1459 = vmatmul.bf16.gmra.mxu2 %v2761_v36 }
 0x1c5   :  { %1548 = vmatmul.bf16.gmra.mxu3 %v2764_v44 }
 0x1c6   :  { %1717 = vst [vmem:[#allocation3 + $0x18] sm:$0xff] %v1685_v54 }
 0x1c7   :  { %v1420_v31 = vpop.f32.mrf.mxu2 }
 0x1c8   :  { %v1421_v1 = vadd.f32 %v1420_v31, %v1332_v0  ;;  %v1509_v28 = vpop.f32.mrf.mxu3  ;;  %v1244_v19 = vpop.f32.mrf.mxu0 }
 0x1c9   :  { %v1333_v32 = vpop.f32.mrf.mxu1 }
 0x1ca   :  { %v1510_v39 = vadd.f32 %v1509_v28, %v1421_v1  ;;  %v1334_v21 = vadd.f32 %v1333_v32, %v1244_v19 }
 0x1cc   :  { %v1686_v45 = vadd.f32 %v2869_v47, %v1510_v39 }
 0x1ce   :  { %1718 = vst [vmem:[#allocation3 + $0x20] sm:$0xff] %v1686_v45 }
 0x1cf   :  { %v1422_v43 = vpop.f32.mrf.mxu2 }
 0x1d0   :  { %v1423_v14 = vadd.f32 %v1422_v43, %v1334_v21  ;;  %v1511_v40 = vpop.f32.mrf.mxu3  ;;  %v1247_v49 = vpop.f32.mrf.mxu0 }
 0x1d1   :  { %v1336_v34 = vpop.f32.mrf.mxu1 }
 0x1d2   :  { %v1512_v36 = vadd.f32 %v1511_v40, %v1423_v14  ;;  %v1337_v58 = vadd.f32 %v1336_v34, %v1247_v49 }
 0x1d3   :  { %1286 = vmatmul.bf16.gmra.mxu0 %v2770_v8 }
 0x1d4   :  { %v1687_v44 = vadd.f32 %v2869_v47, %v1512_v36  ;;  %1375 = vmatmul.bf16.gmra.mxu1 %v2773_v24  ;;  %1464 = vmatmul.bf16.gmra.mxu2 %v2781_v5 }
 0x1d5   :  { %1553 = vmatmul.bf16.gmra.mxu3 %v2784_v22 }
 0x1d6   :  { %1719 = vst [vmem:[#allocation3 + $0x28] sm:$0xff] %v1687_v44 }
 0x1d7   :  { %v1425_v37 = vpop.f32.mrf.mxu2 }
 0x1d8   :  { %v1426_v4 = vadd.f32 %v1425_v37, %v1337_v58  ;;  %v1514_v48 = vpop.f32.mrf.mxu3  ;;  %v1249_v55 = vpop.f32.mrf.mxu0 }
 0x1d9   :  { %v1338_v6 = vpop.f32.mrf.mxu1 }
 0x1da   :  { %v1515_v61 = vadd.f32 %v1514_v48, %v1426_v4  ;;  %v1339_v8 = vadd.f32 %v1338_v6, %v1249_v55 }
 0x1dc   :  { %v1688_v13 = vadd.f32 %v2869_v47, %v1515_v61 }
 0x1de   :  { %1720 = vst [vmem:[#allocation3 + $0x30] sm:$0xff] %v1688_v13 }
 0x1df   :  { %v1427_v63 = vpop.f32.mrf.mxu2 }
 0x1e0   :  { %v1428_v7 = vadd.f32 %v1427_v63, %v1339_v8  ;;  %v1516_v9 = vpop.f32.mrf.mxu3  ;;  %v1252_v24 = vpop.f32.mrf.mxu0 }
 0x1e1   :  { %v1341_v41 = vpop.f32.mrf.mxu1 }
 0x1e2   :  { %v1517_v5 = vadd.f32 %v1516_v9, %v1428_v7  ;;  %v1342_v50 = vadd.f32 %v1341_v41, %v1252_v24 }
 0x1e3   :  { %1291 = vmatmul.bf16.gmra.mxu0 %v2790_v56 }
 0x1e4   :  { %v1689_v22 = vadd.f32 %v2869_v47, %v1517_v5  ;;  %1380 = vmatmul.bf16.gmra.mxu1 %v2793_v57  ;;  %1469 = vmatmul.bf16.gmra.mxu2 %v2801_v42 }
 0x1e5   :  { %1558 = vmatmul.bf16.gmra.mxu3 %v2804_v51 }
 0x1e6   :  { %1721 = vst [vmem:[#allocation3 + $0x38] sm:$0xff] %v1689_v22 }
 0x1e7   :  { %v1430_v53 = vpop.f32.mrf.mxu2 }
 0x1e8   :  { %v1431_v10 = vadd.f32 %v1430_v53, %v1342_v50  ;;  %v1519_v12 = vpop.f32.mrf.mxu3  ;;  %v1254_v18 = vpop.f32.mrf.mxu0 }
 0x1e9   :  { %v1343_v23 = vpop.f32.mrf.mxu1 }
 0x1ea   :  { %v1520_v15 = vadd.f32 %v1519_v12, %v1431_v10  ;;  %v1344_v56 = vadd.f32 %v1343_v23, %v1254_v18 }
 0x1ec   :  { %v1690_v30 = vadd.f32 %v2869_v47, %v1520_v15 }
 0x1ee   :  { %1722 = vst [vmem:[#allocation3 + $0x40] sm:$0xff] %v1690_v30 }
 0x1ef   :  { %v1432_v3 = vpop.f32.mrf.mxu2 }
 0x1f0   :  { %v1433_v25 = vadd.f32 %v1432_v3, %v1344_v56  ;;  %v1521_v27 = vpop.f32.mrf.mxu3  ;;  %v1257_v57 = vpop.f32.mrf.mxu0 }
 0x1f1   :  { %v1346_v20 = vpop.f32.mrf.mxu1 }
 0x1f2   :  { %v1522_v42 = vadd.f32 %v1521_v27, %v1433_v25  ;;  %v1347_v29 = vadd.f32 %v1346_v20, %v1257_v57 }
 0x1f3   :  { %1296 = vmatmul.bf16.gmra.mxu0 %v2810_v46 }
 0x1f4   :  { %v1691_v51 = vadd.f32 %v2869_v47, %v1522_v42  ;;  %1385 = vmatmul.bf16.gmra.mxu1 %v2813_v38  ;;  %1474 = vmatmul.bf16.gmra.mxu2 %v2821_v17 }
 0x1f5   :  { %1563 = vmatmul.bf16.gmra.mxu3 %v2824_v26 }
 0x1f6   :  { %1723 = vst [vmem:[#allocation3 + $0x48] sm:$0xff] %v1691_v51 }
 0x1f7   :  { %v1435_v52 = vpop.f32.mrf.mxu2 }
 0x1f8   :  { %v1436_v54 = vadd.f32 %v1435_v52, %v1347_v29  ;;  %v1524_v0 = vpop.f32.mrf.mxu3  ;;  %v1259_v31 = vpop.f32.mrf.mxu0 }
 0x1f9   :  { %v1348_v1 = vpop.f32.mrf.mxu1 }
 0x1fa   :  { %v1525_v28 = vadd.f32 %v1524_v0, %v1436_v54  ;;  %v1349_v46 = vadd.f32 %v1348_v1, %v1259_v31 }
 0x1fc   :  { %v1692_v19 = vadd.f32 %v2869_v47, %v1525_v28 }
 0x1fe   :  { %1724 = vst [vmem:[#allocation3 + $0x50] sm:$0xff] %v1692_v19 }
 0x1ff   :  { %v1437_v32 = vpop.f32.mrf.mxu2 }
 0x200   :  { %v1438_v39 = vadd.f32 %v1437_v32, %v1349_v46  ;;  %v1526_v45 = vpop.f32.mrf.mxu3  ;;  %v1262_v38 = vpop.f32.mrf.mxu0 }
 0x201   :  { %v1351_v21 = vpop.f32.mrf.mxu1 }
 0x202   :  { %v1527_v17 = vadd.f32 %v1526_v45, %v1438_v39  ;;  %v1352_v43 = vadd.f32 %v1351_v21, %v1262_v38 }
 0x203   :  { %1301 = vmatmul.bf16.gmra.mxu0 %v2830_v35 }
 0x204   :  { %v1693_v26 = vadd.f32 %v2869_v47, %v1527_v17  ;;  %1390 = vmatmul.bf16.gmra.mxu1 %v2833_v16  ;;  %1479 = vmatmul.bf16.gmra.mxu2 %v2841_v60 }
 0x205   :  { %1568 = vmatmul.bf16.gmra.mxu3 %v2844_v59 }
 0x206   :  { %1725 = vst [vmem:[#allocation3 + $0x58] sm:$0xff] %v1693_v26 }
 0x207   :  { %v1440_v14 = vpop.f32.mrf.mxu2 }
 0x208   :  { %v1441_v40 = vadd.f32 %v1440_v14, %v1352_v43  ;;  %v1529_v49 = vpop.f32.mrf.mxu3  ;;  %v1264_v34 = vpop.f32.mrf.mxu0 }
 0x209   :  { %v1353_v36 = vpop.f32.mrf.mxu1 }
 0x20a   :  { %v1530_v44 = vadd.f32 %v1529_v49, %v1441_v40  ;;  %v1354_v35 = vadd.f32 %v1353_v36, %v1264_v34 }
 0x20c   :  { %v1694_v58 = vadd.f32 %v2869_v47, %v1530_v44 }
 0x20e   :  { %1726 = vst [vmem:[#allocation3 + $0x60] sm:$0xff] %v1694_v58 }
 0x20f   :  { %v1442_v37 = vpop.f32.mrf.mxu2 }
 0x210   :  { %v1443_v4 = vadd.f32 %v1442_v37, %v1354_v35  ;;  %v1531_v48 = vpop.f32.mrf.mxu3  ;;  %v1267_v16 = vpop.f32.mrf.mxu0 }
 0x211   :  { %v1356_v55 = vpop.f32.mrf.mxu1 }
 0x212   :  { %v1532_v60 = vadd.f32 %v1531_v48, %v1443_v4  ;;  %v1357_v6 = vadd.f32 %v1356_v55, %v1267_v16 }
 0x213   :  { %1306 = vmatmul.bf16.gmra.mxu0 %v2850_v2 }
 0x214   :  { %v1695_v59 = vadd.f32 %v2869_v47, %v1532_v60  ;;  %1395 = vmatmul.bf16.gmra.mxu1 %v2853_v62  ;;  %1484 = vmatmul.bf16.gmra.mxu2 %v2861_v33 }
 0x215   :  { %1573 = vmatmul.bf16.gmra.mxu3 %v2864_v11 }
 0x216   :  { %1727 = vst [vmem:[#allocation3 + $0x68] sm:$0xff] %v1695_v59 }
 0x217   :  { %v1445_v61 = vpop.f32.mrf.mxu2 }
 0x218   :  { %v1446_v13 = vadd.f32 %v1445_v61, %v1357_v6  ;;  %v1534_v8 = vpop.f32.mrf.mxu3  ;;  %v1269_v63 = vpop.f32.mrf.mxu0 }
 0x219   :  { %v1358_v7 = vpop.f32.mrf.mxu1 }
 0x21a   :  { %v1535_v9 = vadd.f32 %v1534_v8, %v1446_v13  ;;  %v1359_v2 = vadd.f32 %v1358_v7, %v1269_v63 }
 0x21c   :  { %v1696_v24 = vadd.f32 %v2869_v47, %v1535_v9 }
 0x21e   :  { %1728 = vst [vmem:[#allocation3 + $0x70] sm:$0xff] %v1696_v24 }
 0x21f   :  { %v1447_v41 = vpop.f32.mrf.mxu2 }
 0x220   :  { %v1448_v5 = vadd.f32 %v1447_v41, %v1359_v2  ;;  %v1536_v22 = vpop.f32.mrf.mxu3  ;;  %v1272_v62 = vpop.f32.mrf.mxu0 }
 0x221   :  { %v1361_v50 = vpop.f32.mrf.mxu1 }
 0x222   :  { %v1537_v33 = vadd.f32 %v1536_v22, %v1448_v5  ;;  %v1362_v53 = vadd.f32 %v1361_v50, %v1272_v62 }
 0x224   :  { %v1697_v11 = vadd.f32 %v2869_v47, %v1537_v33 }
 0x226   :  { %1729 = vst [vmem:[#allocation3 + $0x78] sm:$0xff] %v1697_v11 }
 0x227   :  { %v1450_v10 = vpop.f32.mrf.mxu2 }
 0x228   :  { %v1451_v12 = vadd.f32 %v1450_v10, %v1362_v53  ;;  %v1539_v18 = vpop.f32.mrf.mxu3  ;;  %v1274_v23 = vpop.f32.mrf.mxu0 }
 0x229   :  { %v1363_v15 = vpop.f32.mrf.mxu1 }
 0x22a   :  { %v1540_v30 = vadd.f32 %v1539_v18, %v1451_v12  ;;  %v1364_v3 = vadd.f32 %v1363_v15, %v1274_v23 }
 0x22c   :  { %v1698_v56 = vadd.f32 %v2869_v47, %v1540_v30 }
 0x22e   :  { %1730 = vst [vmem:[#allocation3 + $0x80] sm:$0xff] %v1698_v56 }
 0x22f   :  { %v1452_v25 = vpop.f32.mrf.mxu2 }
 0x230   :  { %v1453_v27 = vadd.f32 %v1452_v25, %v1364_v3  ;;  %v1541_v57 = vpop.f32.mrf.mxu3  ;;  %v1277_v20 = vpop.f32.mrf.mxu0 }
 0x231   :  { %v1366_v42 = vpop.f32.mrf.mxu1 }
 0x232   :  { %v1542_v51 = vadd.f32 %v1541_v57, %v1453_v27  ;;  %v1367_v52 = vadd.f32 %v1366_v42, %v1277_v20 }
 0x234   :  { %v1699_v29 = vadd.f32 %v2869_v47, %v1542_v51 }
 0x236   :  { %1731 = vst [vmem:[#allocation3 + $0x88] sm:$0xff] %v1699_v29 }
 0x237   :  { %v1455_v54 = vpop.f32.mrf.mxu2 }
 0x238   :  { %v1456_v0 = vadd.f32 %v1455_v54, %v1367_v52  ;;  %v1544_v31 = vpop.f32.mrf.mxu3  ;;  %v1279_v1 = vpop.f32.mrf.mxu0 }
 0x239   :  { %v1368_v28 = vpop.f32.mrf.mxu1 }
 0x23a   :  { %v1545_v19 = vadd.f32 %v1544_v31, %v1456_v0  ;;  %v1369_v32 = vadd.f32 %v1368_v28, %v1279_v1 }
 0x23c   :  { %v1700_v46 = vadd.f32 %v2869_v47, %v1545_v19 }
 0x23e   :  { %1732 = vst [vmem:[#allocation3 + $0x90] sm:$0xff] %v1700_v46 }
 0x23f   :  { %v1457_v39 = vpop.f32.mrf.mxu2 }
 0x240   :  { %v1458_v45 = vadd.f32 %v1457_v39, %v1369_v32  ;;  %v1546_v38 = vpop.f32.mrf.mxu3  ;;  %v1282_v21 = vpop.f32.mrf.mxu0 }
 0x241   :  { %v1371_v17 = vpop.f32.mrf.mxu1 }
 0x242   :  { %v1547_v26 = vadd.f32 %v1546_v38, %v1458_v45  ;;  %v1372_v14 = vadd.f32 %v1371_v17, %v1282_v21 }
 0x244   :  { %v1701_v43 = vadd.f32 %v2869_v47, %v1547_v26 }
 0x246   :  { %1733 = vst [vmem:[#allocation3 + $0x98] sm:$0xff] %v1701_v43 }
 0x247   :  { %v1460_v40 = vpop.f32.mrf.mxu2 }
 0x248   :  { %v1461_v49 = vadd.f32 %v1460_v40, %v1372_v14  ;;  %v1549_v34 = vpop.f32.mrf.mxu3  ;;  %v1284_v36 = vpop.f32.mrf.mxu0 }
 0x249   :  { %v1373_v44 = vpop.f32.mrf.mxu1 }
 0x24a   :  { %v1550_v58 = vadd.f32 %v1549_v34, %v1461_v49  ;;  %v1374_v37 = vadd.f32 %v1373_v44, %v1284_v36 }
 0x24c   :  { %v1702_v35 = vadd.f32 %v2869_v47, %v1550_v58 }
 0x24e   :  { %1734 = vst [vmem:[#allocation3 + $0xa0] sm:$0xff] %v1702_v35 }
 0x24f   :  { %v1462_v4 = vpop.f32.mrf.mxu2 }
 0x250   :  { %v1463_v48 = vadd.f32 %v1462_v4, %v1374_v37  ;;  %v1551_v16 = vpop.f32.mrf.mxu3  ;;  %v1287_v55 = vpop.f32.mrf.mxu0 }
 0x251   :  { %v1376_v60 = vpop.f32.mrf.mxu1 }
 0x252   :  { %v1552_v59 = vadd.f32 %v1551_v16, %v1463_v48  ;;  %v1377_v61 = vadd.f32 %v1376_v60, %v1287_v55 }
 0x254   :  { %v1703_v6 = vadd.f32 %v2869_v47, %v1552_v59 }
 0x256   :  { %1735 = vst [vmem:[#allocation3 + $0xa8] sm:$0xff] %v1703_v6 }
 0x257   :  { %v1465_v13 = vpop.f32.mrf.mxu2 }
 0x258   :  { %v1466_v8 = vadd.f32 %v1465_v13, %v1377_v61  ;;  %v1554_v63 = vpop.f32.mrf.mxu3  ;;  %v1289_v7 = vpop.f32.mrf.mxu0 }
 0x259   :  { %v1378_v9 = vpop.f32.mrf.mxu1 }
 0x25a   :  { %v1555_v24 = vadd.f32 %v1554_v63, %v1466_v8  ;;  %v1379_v41 = vadd.f32 %v1378_v9, %v1289_v7 }
 0x25c   :  { %v1704_v2 = vadd.f32 %v2869_v47, %v1555_v24 }
 0x25e   :  { %1736 = vst [vmem:[#allocation3 + $0xb0] sm:$0xff] %v1704_v2 }
 0x25f   :  { %v1467_v5 = vpop.f32.mrf.mxu2 }
 0x260   :  { %v1468_v22 = vadd.f32 %v1467_v5, %v1379_v41  ;;  %v1556_v62 = vpop.f32.mrf.mxu3  ;;  %v1292_v50 = vpop.f32.mrf.mxu0 }
 0x261   :  { %v1381_v33 = vpop.f32.mrf.mxu1 }
 0x262   :  { %v1557_v11 = vadd.f32 %v1556_v62, %v1468_v22  ;;  %v1382_v10 = vadd.f32 %v1381_v33, %v1292_v50 }
 0x264   :  { %v1705_v53 = vadd.f32 %v2869_v47, %v1557_v11 }
 0x266   :  { %1737 = vst [vmem:[#allocation3 + $0xb8] sm:$0xff] %v1705_v53 }
 0x267   :  { %v1470_v12 = vpop.f32.mrf.mxu2 }
 0x268   :  { %v1471_v18 = vadd.f32 %v1470_v12, %v1382_v10  ;;  %v1559_v23 = vpop.f32.mrf.mxu3  ;;  %v1294_v15 = vpop.f32.mrf.mxu0 }
 0x269   :  { %v1383_v30 = vpop.f32.mrf.mxu1 }
 0x26a   :  { %v1560_v56 = vadd.f32 %v1559_v23, %v1471_v18  ;;  %v1384_v25 = vadd.f32 %v1383_v30, %v1294_v15 }
 0x26c   :  { %v1706_v3 = vadd.f32 %v2869_v47, %v1560_v56 }
 0x26e   :  { %1738 = vst [vmem:[#allocation3 + $0xc0] sm:$0xff] %v1706_v3 }
 0x26f   :  { %v1472_v27 = vpop.f32.mrf.mxu2 }
 0x270   :  { %v1473_v57 = vadd.f32 %v1472_v27, %v1384_v25  ;;  %v1561_v20 = vpop.f32.mrf.mxu3  ;;  %v1297_v42 = vpop.f32.mrf.mxu0 }
 0x271   :  { %v1386_v51 = vpop.f32.mrf.mxu1 }
 0x272   :  { %v1562_v29 = vadd.f32 %v1561_v20, %v1473_v57  ;;  %v1387_v54 = vadd.f32 %v1386_v51, %v1297_v42 }
 0x274   :  { %v1707_v52 = vadd.f32 %v2869_v47, %v1562_v29 }
 0x276   :  { %1739 = vst [vmem:[#allocation3 + $0xc8] sm:$0xff] %v1707_v52 }
 0x277   :  { %v1475_v0 = vpop.f32.mrf.mxu2 }
 0x278   :  { %v1476_v31 = vadd.f32 %v1475_v0, %v1387_v54  ;;  %v1564_v1 = vpop.f32.mrf.mxu3  ;;  %v1299_v28 = vpop.f32.mrf.mxu0 }
 0x279   :  { %v1388_v19 = vpop.f32.mrf.mxu1 }
 0x27a   :  { %v1565_v46 = vadd.f32 %v1564_v1, %v1476_v31  ;;  %v1389_v39 = vadd.f32 %v1388_v19, %v1299_v28 }
 0x27c   :  { %v1708_v32 = vadd.f32 %v2869_v47, %v1565_v46 }
 0x27e   :  { %1740 = vst [vmem:[#allocation3 + $0xd0] sm:$0xff] %v1708_v32 }
 0x27f   :  { %v1477_v45 = vpop.f32.mrf.mxu2 }
 0x280   :  { %v1478_v38 = vadd.f32 %v1477_v45, %v1389_v39  ;;  %v1566_v21 = vpop.f32.mrf.mxu3  ;;  %v1302_v17 = vpop.f32.mrf.mxu0 }
 0x281   :  { %v1391_v26 = vpop.f32.mrf.mxu1 }
 0x282   :  { %v1567_v43 = vadd.f32 %v1566_v21, %v1478_v38  ;;  %v1392_v40 = vadd.f32 %v1391_v26, %v1302_v17 }
 0x284   :  { %v1709_v14 = vadd.f32 %v2869_v47, %v1567_v43 }
 0x286   :  { %1741 = vst [vmem:[#allocation3 + $0xd8] sm:$0xff] %v1709_v14 }
 0x287   :  { %v1480_v49 = vpop.f32.mrf.mxu2 }
 0x288   :  { %v1481_v34 = vadd.f32 %v1480_v49, %v1392_v40  ;;  %v1569_v36 = vpop.f32.mrf.mxu3  ;;  %v1304_v44 = vpop.f32.mrf.mxu0 }
 0x289   :  { %v1393_v58 = vpop.f32.mrf.mxu1 }
 0x28a   :  { %v1570_v35 = vadd.f32 %v1569_v36, %v1481_v34  ;;  %v1394_v4 = vadd.f32 %v1393_v58, %v1304_v44 }
 0x28c   :  { %v1710_v37 = vadd.f32 %v2869_v47, %v1570_v35 }
 0x28e   :  { %1742 = vst [vmem:[#allocation3 + $0xe0] sm:$0xff] %v1710_v37 }
 0x28f   :  { %v1482_v48 = vpop.f32.mrf.mxu2 }
 0x290   :  { %v1483_v16 = vadd.f32 %v1482_v48, %v1394_v4  ;;  %v1571_v55 = vpop.f32.mrf.mxu3  ;;  %v1307_v60 = vpop.f32.mrf.mxu0 }
 0x291   :  { %v1396_v59 = vpop.f32.mrf.mxu1 }
 0x292   :  { %v1572_v6 = vadd.f32 %v1571_v55, %v1483_v16  ;;  %v1397_v13 = vadd.f32 %v1396_v59, %v1307_v60 }
 0x294   :  { %v1711_v61 = vadd.f32 %v2869_v47, %v1572_v6 }
 0x296   :  { %1743 = vst [vmem:[#allocation3 + $0xe8] sm:$0xff] %v1711_v61 }
 0x297   :  { %v1485_v8 = vpop.f32.mrf.mxu2 }
 0x298   :  { %v1486_v63 = vadd.f32 %v1485_v8, %v1397_v13  ;;  %v1574_v7 = vpop.f32.mrf.mxu3  ;;  %v1309_v24 = vpop.f32.mrf.mxu0 }
 0x299   :  { %v1398_v2 = vpop.f32.mrf.mxu1 }
 0x29a   :  { %v1575_v9 = vadd.f32 %v1574_v7, %v1486_v63  ;;  %v1399_v5 = vadd.f32 %v1398_v2, %v1309_v24 }
 0x29c   :  { %v1712_v41 = vadd.f32 %v2869_v47, %v1575_v9 }
 0x29e   :  { %1744 = vst [vmem:[#allocation3 + $0xf0] sm:$0xff] %v1712_v41 }
 0x29f   :  { %v1487_v22 = vpop.f32.mrf.mxu2 }
 0x2a0   :  { %v1488_v62 = vadd.f32 %v1487_v22, %v1399_v5  ;;  %v1576_v50 = vpop.f32.mrf.mxu3 }
 0x2a2   :  { %v1577_v33 = vadd.f32 %v1576_v50, %v1488_v62 }
 0x2a4   :  { %v1713_v11 = vadd.f32 %v2869_v47, %v1577_v33 }
 0x2a6   :  { %1745 = vst [vmem:[#allocation3 + $0xf8] sm:$0xff] %v1713_v11 }
 0x2a7   :  { %1758 = dma.vmem_to_hbm [thread:$0]  %s1751_s13, 4096, %s1753_s16, [#allocation4], %s2195_s17, %s2195_s17, %s2196_s18  }
 0x2a8   :  { %2192 = dma.done.wait [#allocation4], 4096  }
 0x2a9   :  { %2193 = vsyncadd [#allocation4], 4294963200 }
 0x2aa   :  { %1763 = vsyncpa [#allocation4], 1 }

</bundles_post_ra>
